<compile_context>
chip_gen: v7x
topology: tpu7x:2x2x1
jax: 0.10.0
libtpu: 0.0.40
codegen_flags: <defaults>
</compile_context>

<pallas_src>
import jax
import jax.numpy as jnp
from jax.experimental import pallas as pl
from jax.experimental.pallas import tpu as pltpu

FEATURE_DIM = 64  # fixed by nn.Linear(64, output_dimension) in the module


def vision_kernel(x_ref, w_emb_ref, b_emb_ref, w_fc_ref, b_fc_ref, out_ref):
    """Fused backbone stand-in + fc for one batch tile.

    x_ref:     (TB, C, P)  channel-major pixels, P = H*W (f32 or bf16)
    w_emb_ref: (64, C)     spectral embedding weight, stored (out, in)
    b_emb_ref: (64, 1)     spectral embedding bias
    w_fc_ref:  (64, D)     fc weight (in x out) with the 1/P mean scale folded in
    b_fc_ref:  (1, D)      fc bias
    out_ref:   (TB, D)     output tile (lane-dense store)
    """
    tb, c, _ = x_ref.shape

    x = x_ref[...]
    if x.dtype != jnp.bfloat16:          # bf16 inputs skip the cast entirely
        x = x.astype(jnp.bfloat16)       # in-register cast; MXU consumes bf16

    # Single hoisted weight broadcast per grid step, then ONE batched MXU
    # contraction over the spectral axis:
    #   emb[b, d, p] = sum_c w_emb[d, c] * x[b, c, p]      ('bdc,bcp->bdp')
    w_b = jnp.broadcast_to(w_emb_ref[...].astype(jnp.bfloat16),
                           (tb, FEATURE_DIM, c))
    emb = jax.lax.dot_general(
        w_b, x,
        dimension_numbers=(((2,), (1,)), ((0,), (0,))),
        preferred_element_type=jnp.float32,
    )                                                      # (TB, 64, P) f32

    # tanh-approx GELU (PyTorch nn.GELU defaults to exact erf; the FAHM
    # backbone is a stand-in, so the cheaper EUP-friendly form is used).
    act = jax.nn.gelu(emb + b_emb_ref[...])                # bias bcast (64, 1)

    # Spatial sum-pool: one lane reduce; the mean's 1/P is folded into w_fc.
    feat = jnp.sum(act, axis=-1)                           # (TB, 64) in regs

    # fc: conventional (TB,64) x (64,D) matmul, f32 accumulation.
    out = jnp.dot(feat, w_fc_ref[...],
                  preferred_element_type=jnp.float32) + b_fc_ref[...]
    out_ref[...] = out.astype(out_ref.dtype)


def _vmem_budget_bytes():
    """Per-generation VMEM budget (v7x: 64 MiB/TC physical vs 128 on v5e/v6e)."""
    try:
        cap = int(pltpu.get_tpu_info().vmem_capacity_bytes)
    except Exception:
        cap = 64 * 1024 * 1024           # conservative fallback (v7x-sized)
    return min((cap * 3) // 4, 96 * 1024 * 1024)


def _choose_batch_tile(B, C, P, D, in_itemsize, vmem_budget, requested=None):
    """Sublane-aligned batch tile, as big as the VMEM budget allows (the kernel
    is HBM-bound, so big blocks hit the HBM roofline), but with >= 2 grid steps
    whenever the batch allows so v7x can shard tiles across both TensorCores."""
    # Rough per-image VMEM working set of one pipeline stage.
    per_img = (2 * C * P * in_itemsize      # double-buffered x block
               + 2 * C * P                  # bf16 copy of the tile
               + 2 * FEATURE_DIM * P * 4    # emb + GELU activations (f32)
               + 2 * FEATURE_DIM * C        # broadcast embedding weight (bf16)
               + 2 * D * 4)                 # double-buffered out block
    fixed = 4 * 1024 * 1024                 # weights + Mosaic internal scratch
    tb_cap = max(8, int((vmem_budget - fixed) // max(per_img, 1)))

    tb = 128 if requested is None else int(requested)
    tb = min(tb, tb_cap, 128)
    if B <= 8:
        return B                            # single full-batch block
    tb = max(8, (tb // 8) * 8)              # sublane-aligned (8x)
    half = ((B + 1) // 2 + 7) // 8 * 8      # keep >= 2 grid steps (v7x megacore)
    tb = min(tb, max(8, half))
    return min(tb, ((B + 7) // 8) * 8)


def vision_model_forward(pixel_values, params, *, batch_tile=None,
                         return_type_list=True):
    """pixel_values: NCHW (B, bands, H, W), float32 or bfloat16."""
    B, C, H, W = pixel_values.shape
    w_emb, b_emb, w_fc, b_fc = params
    D = w_fc.shape[1]
    P = H * W

    # NCHW -> (B, C, P): a pure reshape (no transpose) => no extra HBM pass.
    x = pixel_values.reshape(B, C, P)

    # Fold the 1/P mean-pool scale into the fc weight (tiny host-side op).
    w_fc_scaled = (w_fc * (1.0 / P)).astype(jnp.float32)

    vmem_budget = _vmem_budget_bytes()
    tb = _choose_batch_tile(B, C, P, D, x.dtype.itemsize, vmem_budget,
                            requested=batch_tile)
    nb = pl.cdiv(B, tb)
    # NOTE: a partial last tile leaves unspecified rows in the x block; their
    # garbage stays confined to their own rows (no cross-batch reduction) and
    # the output writeback is masked, so results are unaffected.

    # VMEM actually needed by this tiling (+ slack), capped by the budget.
    block_bytes = (2 * tb * C * P * x.dtype.itemsize       # x pipeline buffers
                   + 2 * tb * D * 4                        # out pipeline buffers
                   + 3 * tb * C * P                        # bf16 cast + headroom
                   + 2 * tb * FEATURE_DIM * P * 4          # activations
                   + 2 * (w_emb.size + b_emb.size + w_fc.size + b_fc.size) * 4)
    vmem_limit = int(min(max(block_bytes + 4 * 1024 * 1024, 16 * 1024 * 1024),
                         vmem_budget))

    flops = 2 * B * P * C * FEATURE_DIM + 2 * B * FEATURE_DIM * D
    transcendentals = B * P * FEATURE_DIM
    bytes_accessed = (x.size * x.dtype.itemsize
                      + 4 * (w_emb.size + b_emb.size + w_fc.size + b_fc.size)
                      + 4 * B * D)

    out = pl.pallas_call(
        vision_kernel,
        out_shape=jax.ShapeDtypeStruct((B, D), jnp.float32),
        grid=(nb,),
        in_specs=[
            pl.BlockSpec((tb, C, P), lambda i: (i, 0, 0)),       # x batch tile
            pl.BlockSpec((FEATURE_DIM, C), lambda i: (0, 0)),    # w_emb (resident)
            pl.BlockSpec((FEATURE_DIM, 1), lambda i: (0, 0)),    # b_emb (resident)
            pl.BlockSpec((FEATURE_DIM, D), lambda i: (0, 0)),    # w_fc  (resident)
            pl.BlockSpec((1, D), lambda i: (0, 0)),              # b_fc  (resident)
        ],
        out_specs=pl.BlockSpec((tb, D), lambda i: (i, 0)),       # lane-dense store
        compiler_params=pltpu.CompilerParams(
            dimension_semantics=("parallel",),   # v7x: shard tiles over 2 TCs
            vmem_limit_bytes=vmem_limit,
        ),
        cost_estimate=pl.CostEstimate(
            flops=flops,
            transcendentals=transcendentals,
            bytes_accessed=bytes_accessed,
        ),
    )(x, w_emb, b_emb, w_fc_scaled, b_fc)

    out = out[:, None, :]  # x.unsqueeze(1)
    return [out] if return_type_list else out


def init_params(key, bands, output_dimension):
    k1, k2, k3, k4 = jax.random.split(key, 4)
    # Stand-in spectral embedding weight, stored (out_features, in_features).
    w_emb = jax.random.normal(k1, (FEATURE_DIM, bands), jnp.float32) * 0.02
    b_emb = jax.random.normal(k2, (FEATURE_DIM, 1), jnp.float32) * 0.01
    # fc stored (in_features, out_features) = PyTorch weight transposed.
    w_fc = jax.random.normal(k3, (FEATURE_DIM, output_dimension), jnp.float32) * 0.02
    b_fc = jax.random.normal(k4, (1, output_dimension), jnp.float32) * 0.01
    return (w_emb, b_emb, w_fc, b_fc)


if __name__ == "__main__":
    # Small shapes consistent with the module (defaults bands=200, patch=11,
    # output_dimension=768 reduced for a quick test).  B=16 with the auto tile
    # gives a 2-step grid, so the batch-pipelining / megacore path is exercised.
    batch = 16
    bands = 32
    patch_size = 8
    output_dimension = 256

    key = jax.random.PRNGKey(0)
    k_in, k_params = jax.random.split(key)

    pixel_values = jax.random.normal(
        k_in, (batch, bands, patch_size, patch_size), jnp.float32)
    params = init_params(k_params, bands, output_dimension)

    result = vision_model_forward(pixel_values, params, return_type_list=True)
    out = jax.block_until_ready(result[0])

    assert out.shape == (batch, 1, output_dimension), out.shape
    assert bool(jnp.all(jnp.isfinite(out)))

    # Pure-JAX reference of the same stand-in math (f32 end-to-end).
    w_emb, b_emb, w_fc, b_fc = params
    x_bcp = pixel_values.reshape(batch, bands, -1)
    emb = jnp.einsum("bcp,dc->bpd", x_bcp, w_emb) + b_emb.T[None]
    feat = jax.nn.gelu(emb).mean(axis=1)
    ref = feat @ w_fc + b_fc
    assert jnp.allclose(out[:, 0, :], ref, rtol=5e-2, atol=1e-2), (
        float(jnp.max(jnp.abs(out[:, 0, :] - ref))))

    print("KERNEL_OK")
</pallas_src>

<mosaic_0001>
module attributes {stable_mosaic.version = 11 : i64} {
  func.func @vision_kernel(%arg0: i32, %arg1: memref<8x32x64xf32, #tpu.memory_space<vmem>>, %arg2: memref<64x32xf32, #tpu.memory_space<vmem>>, %arg3: memref<64x1xf32, #tpu.memory_space<vmem>>, %arg4: memref<64x256xf32, #tpu.memory_space<vmem>>, %arg5: memref<1x256xf32, #tpu.memory_space<vmem>>, %arg6: memref<8x256xf32, #tpu.memory_space<vmem>>) attributes {dimension_semantics = [#tpu.dimension_semantics<parallel>], iteration_bounds = array<i64: 2>, scalar_prefetch = 0 : i64, scratch_operands = 0 : i64, tpu.core_type = #tpu.core_type<tc>, window_params = [{transform_indices = @transform_0, window_bounds = array<i64: 8, 32, 64>}, {pipeline_mode = #tpu.pipeline_mode<synchronous>, transform_indices = @transform_1, window_bounds = array<i64: 64, 32>}, {pipeline_mode = #tpu.pipeline_mode<synchronous>, transform_indices = @transform_2, window_bounds = array<i64: 64, 1>}, {pipeline_mode = #tpu.pipeline_mode<synchronous>, transform_indices = @transform_3, window_bounds = array<i64: 64, 256>}, {pipeline_mode = #tpu.pipeline_mode<synchronous>, transform_indices = @transform_4, window_bounds = array<i64: 1, 256>}, {transform_indices = @transform_5, window_bounds = array<i64: 8, 256>}]} {
    %c0 = arith.constant 0 : index
    %c0_0 = arith.constant 0 : index
    %c0_1 = arith.constant 0 : index
    %0 = vector.load %arg1[%c0, %c0_0, %c0_1] : memref<8x32x64xf32, #tpu.memory_space<vmem>>, vector<8x32x64xf32>
    %1 = arith.truncf %0 : vector<8x32x64xf32> to vector<8x32x64xbf16>
    %c0_2 = arith.constant 0 : index
    %c0_3 = arith.constant 0 : index
    %2 = vector.load %arg2[%c0_2, %c0_3] : memref<64x32xf32, #tpu.memory_space<vmem>>, vector<64x32xf32>
    %3 = arith.truncf %2 : vector<64x32xf32> to vector<64x32xbf16>
    %4 = vector.shape_cast %3 : vector<64x32xbf16> to vector<1x64x32xbf16>
    %5 = vector.broadcast %4 : vector<1x64x32xbf16> to vector<8x64x32xbf16>
    %cst = arith.constant dense<0.000000e+00> : vector<8x64x64xf32>
    %6 = tpu.matmul %5, %1, %cst {dimension_numbers = #tpu.dot_dimension_numbers<[2], [1], [1], [2], [0, 0, 0, 1, 1, 2], [0], [0]>} : vector<8x64x32xbf16>, vector<8x32x64xbf16>, vector<8x64x64xf32> -> vector<8x64x64xf32>
    %c0_4 = arith.constant 0 : index
    %c0_5 = arith.constant 0 : index
    %7 = vector.load %arg3[%c0_4, %c0_5] : memref<64x1xf32, #tpu.memory_space<vmem>>, vector<64x1xf32>
    %8 = vector.shape_cast %7 : vector<64x1xf32> to vector<1x64x1xf32>
    %9 = vector.broadcast %8 : vector<1x64x1xf32> to vector<8x64x64xf32>
    %10 = arith.addf %6, %9 : vector<8x64x64xf32>
    %11 = arith.mulf %10, %10 : vector<8x64x64xf32>
    %12 = arith.mulf %10, %11 : vector<8x64x64xf32>
    %cst_6 = arith.constant 4.471500e-02 : f32
    %13 = vector.broadcast %cst_6 : f32 to vector<8x64x64xf32>
    %14 = arith.mulf %13, %12 : vector<8x64x64xf32>
    %15 = arith.addf %10, %14 : vector<8x64x64xf32>
    %cst_7 = arith.constant 0.797884583 : f32
    %16 = vector.broadcast %cst_7 : f32 to vector<8x64x64xf32>
    %17 = arith.mulf %16, %15 : vector<8x64x64xf32>
    %18 = math.tanh %17 : vector<8x64x64xf32>
    %cst_8 = arith.constant 1.000000e+00 : f32
    %19 = vector.broadcast %cst_8 : f32 to vector<8x64x64xf32>
    %20 = arith.addf %19, %18 : vector<8x64x64xf32>
    %cst_9 = arith.constant 5.000000e-01 : f32
    %21 = vector.broadcast %cst_9 : f32 to vector<8x64x64xf32>
    %22 = arith.mulf %21, %20 : vector<8x64x64xf32>
    %23 = arith.mulf %10, %22 : vector<8x64x64xf32>
    %cst_10 = arith.constant dense<0.000000e+00> : vector<8x64xf32>
    %24 = vector.multi_reduction <add>, %23, %cst_10 [2] : vector<8x64x64xf32> to vector<8x64xf32>
    %c0_11 = arith.constant 0 : index
    %c0_12 = arith.constant 0 : index
    %25 = vector.load %arg4[%c0_11, %c0_12] : memref<64x256xf32, #tpu.memory_space<vmem>>, vector<64x256xf32>
    %cst_13 = arith.constant dense<0.000000e+00> : vector<8x256xf32>
    %26 = tpu.matmul %24, %25, %cst_13 {dimension_numbers = #tpu.dot_dimension_numbers<[1], [0], [0], [1], [0, 0, 1, 1], [], []>} : vector<8x64xf32>, vector<64x256xf32>, vector<8x256xf32> -> vector<8x256xf32>
    %c0_14 = arith.constant 0 : index
    %c0_15 = arith.constant 0 : index
    %27 = vector.load %arg5[%c0_14, %c0_15] : memref<1x256xf32, #tpu.memory_space<vmem>>, vector<1x256xf32>
    %28 = vector.broadcast %27 : vector<1x256xf32> to vector<8x256xf32>
    %29 = arith.addf %26, %28 : vector<8x256xf32>
    %c0_16 = arith.constant 0 : index
    %c0_17 = arith.constant 0 : index
    %30 = vector.load %arg6[%c0_16, %c0_17] : memref<8x256xf32, #tpu.memory_space<vmem>>, vector<8x256xf32>
    tpu.vector_store %arg6[%c0_16, %c0_17], %29 {strides = array<i32>} : memref<8x256xf32, #tpu.memory_space<vmem>>, vector<8x256xf32>,
    return
  }
  func.func @transform_0(%arg0: i32) -> (i32, i32, i32) {
    %c0_i32 = arith.constant 0 : i32
    %c0_i32_0 = arith.constant 0 : i32
    %c0_i32_1 = arith.constant 0 : i32
    return %arg0, %c0_i32, %c0_i32_0 : i32, i32, i32
  }
  func.func @transform_1(%arg0: i32) -> (i32, i32) {
    %c0_i32 = arith.constant 0 : i32
    %c0_i32_0 = arith.constant 0 : i32
    %c0_i32_1 = arith.constant 0 : i32
    return %c0_i32, %c0_i32_0 : i32, i32
  }
  func.func @transform_2(%arg0: i32) -> (i32, i32) {
    %c0_i32 = arith.constant 0 : i32
    %c0_i32_0 = arith.constant 0 : i32
    %c0_i32_1 = arith.constant 0 : i32
    return %c0_i32, %c0_i32_0 : i32, i32
  }
  func.func @transform_3(%arg0: i32) -> (i32, i32) {
    %c0_i32 = arith.constant 0 : i32
    %c0_i32_0 = arith.constant 0 : i32
    %c0_i32_1 = arith.constant 0 : i32
    return %c0_i32, %c0_i32_0 : i32, i32
  }
  func.func @transform_4(%arg0: i32) -> (i32, i32) {
    %c0_i32 = arith.constant 0 : i32
    %c0_i32_0 = arith.constant 0 : i32
    %c0_i32_1 = arith.constant 0 : i32
    return %c0_i32, %c0_i32_0 : i32, i32
  }
  func.func @transform_5(%arg0: i32) -> (i32, i32) {
    %c0_i32 = arith.constant 0 : i32
    %c0_i32_0 = arith.constant 0 : i32
    return %arg0, %c0_i32 : i32, i32
  }
}

</mosaic_0001>

<bundles_post_ra>
// kernel: tpu_custom_call.1
= control target key start
LH: loop header
LB: loop body
LE: loop exit
PB: predicated region body
PF: predicated region fallthrough
CT: control target
= control target key end

     0   :  { %10 = vsyncpa [#allocation3], 0  ;;  %s4237_s0 = inlined_call_operand.hbm [shape: f32[16,32,64], index: 0, kind: input, shape index: {}]   ;;  %s4238_s1 = inlined_call_operand.vmem [shape: f32[64,32], index: 1, kind: input, shape index: {}]   ;;  %s4239_s2 = inlined_call_operand.vmem [shape: f32[64,1], index: 2, kind: input, shape index: {}]   ;;  %s4240_s3 = inlined_call_operand.vmem [shape: f32[64,256], index: 3, kind: input, shape index: {}]   ;;  %s4241_s4 = inlined_call_operand.vmem [shape: f32[1,256], index: 4, kind: input, shape index: {}]   ;;  %s4242_s5 = inlined_call_operand.hbm [shape: f32[16,256], index: 5, kind: output, shape index: {}]  }
   0x1   :  { %12 = vsyncpa [#allocation3 + $0x1], 0 }
   0x2   :  { %13 = vsyncpa [#allocation4], 0 }
   0x3   :  { %15 = vsyncpa [#allocation4 + $0x1], 0  ;;  %s2775_s18 = smov 0   ;;  %s2777_s19 = smov 0  }
   0x4   :  { %s2779_s20 = smov 0   ;;  %s2781_s21 = smov 0  }
   0x5 LB: > { %s2796_s22 = sadd.s32 4294967295, %s2737_s21   ;;  %s2250_s23 = sadd.s32 4294967294, %s2737_s21   ;;  %s2737_s21 = sphi %s2781_s21, %s4458_s21   ;;  %s2733_s20 = sphi %s2779_s20, %s4457_s20   ;;  %s2729_s19 = sphi %s2777_s19, %s4456_s19   ;;  %s2725_s18 = sphi %s2775_s18, %s4455_s18  }
   0x6   : > { %s2800_s24 = sadd.s32 1, %s2737_s21   ;;  %s28_s25 = sadd.s32 1, %s2733_s20 }
   0x7   : > { %s25_s26 = ssub.s32 %s2737_s21, %s2800_s24  ;;  %p35_p0 = scmp.ne.s32.totalorder %s2733_s20, %s2729_s19 }
   0x8   : > { %p26_p1 = scmp.eq.s32.totalorder %s25_s26, 0  ;;  %p36_p2 = scmp.eq.s32.totalorder %s2737_s21, 0 }
   0x9   : > { %p41_p3 = scmp.ne.s32.totalorder %s2729_s19, %s2725_s18  ;;  %p42_p4 = scmp.eq.s32.totalorder %s2796_s22, 0 }
   0xa   : > { %s2812_s27 = scalar_select %p26_p1, %s2733_s20, %s28_s25  }
   0xb   : > { %p2814_p5 = por %p36_p2, %p35_p0  ;;  %p2818_p6 = por %p42_p4, %p41_p3 }
   0xc   : > { %p149_p7 = scmp.eq.s32.totalorder %s2796_s22, 1  ;;  %p155_p8 = scmp.eq.s32.totalorder %s2250_s23, 1 }
   0xd   : > { %p2473_p10 = scmp.lt.s32.totalorder %s2737_s21, 2  ;;  %s187_s7 = sand.u32 1, %s2733_s20  }
   0xe   : > { %p2825_p11 = por %p149_p7, %p35_p0  ;;  %p2829_p12 = por %p155_p8, %p41_p3 }
   0xf   : > { %s2299_s8 = sshll.u32 %s2737_s21, 12  ;;  %s2253_s9 = sshll.u32 %s187_s7, 8 }
  0x10   : > { %s4292_s30 = scalar_select %p2825_p11, 1, 0 }
  0x11   : > { %s4293_s6 = scalar_select %p2829_p12, 1, 0 }
  0x12   : > { %s2838_s12 = scalar_lea.hbm %s4237_s0, %s2299_s8  ;;  %s191_s13 = scalar_lea.vmem [#allocation2], %s2253_s9 }
  0x13   : > { %s199_s14 = sshll.u32 %s191_s13, 4  ;;  %p2842_p13 = pnand %p2473_p10, %p2814_p5  ;;  %s2846_s14 = int_to_ptr.vmem [resolvable:$true] %s199_s14 }
  0x14   : > { %s2848_s16 = scalar_lea.sflag [#allocation3], %s187_s7  ;;  %s2641_s17 = scalar_lea.hbm %s2838_s12, 4096 }
  0x15   : > { %p2642_p0 = scmp.ne.s32.totalorder %s2838_s12, %s2641_s17  ;;  %p2643_p1 = pneg %p2842_p13 }
  0x16   : > { %s2646_s26 = scalar_lea.hbm %s4237_s0, 8192  ;;  %p2647_p4 = scmp.lt.u32.totalorder %s2838_s12, %s4237_s0 }
  0x17   : > { %p2644_p2 = pnand %p2643_p1, %p2642_p0  ;;  %p2648_p5 = scmp.lt.u32.totalorder %s2646_s26, %s2641_s17 }
  0x18   : > { %p2650_p8 = scmp.lt.u32.totalorder %s2641_s17, %s2838_s12 }
  0x19   : > { %p2645_p3 = pneg %p2644_p2  ;;  %p2649_p7 = por %p2648_p5, %p2647_p4 }
  0x1b   : > { %p2651_p10 = por %p2650_p8, %p2649_p7 }
  0x1d   : > { %p2652_p9 = pnand %p2651_p10, %p2645_p3 }
  0x1f   : > { %2655 = shalt.err (!%p2652_p9)
}
  0x20   : > { %s2656_s7 = scalar_lea.vmem %s2846_s14, 4096  ;;  %s2739_s9 = smov [#allocation2]  }
  0x21   : > { %p2657_p0 = scmp.ne.s32.totalorder %s2846_s14, %s2656_s7  ;;  %s2661_s10 = sshll.u32 %s2739_s9, 4  ;;  %s2662_s10 = int_to_ptr.vmem [resolvable:$false] %s2661_s10 }
  0x22   : > { %s2663_s11 = scalar_lea.vmem %s2662_s10, 8192  ;;  %p2664_p11 = scmp.lt.s32.totalorder %s2846_s14, %s2662_s10 }
  0x23   : > { %p2659_p2 = pnand %p2657_p0, %p2643_p1  ;;  %p2665_p4 = scmp.lt.s32.totalorder %s2663_s11, %s2656_s7 }
  0x25   : > { %p2660_p12 = pneg %p2659_p2  ;;  %p2666_p5 = por %p2665_p4, %p2664_p11 }
  0x27   : > { %p2667_p7 = pnand %p2666_p5, %p2660_p12 }
  0x29   : > { %2670 = shalt.err (!%p2667_p7)
}
  0x2a   : > { %s2740_s13 = smov 128   ;;  %s2741_s17 = smov 8  }
  0x2b   : > { %2468 = dma.hbm_to_vmem [thread:$0]  (!%p2842_p13), %s2838_s12, 4096, %s2846_s14, %s2848_s16, %s2740_s13, %s2740_s13, %s2741_s17  }
  0x2c   : > { %p2257_p9 = scmp.ge.s32.totalorder %s2737_s21, 1  ;;  %p207_p1 = scmp.lt.s32.totalorder %s2737_s21, 3 }
  0x2e   : > { %p208_p3 = pnand %p2257_p9, %p207_p1 }
  0x30   : > { %211 = sbr.rel (%p208_p3) target bundleno = 875 (0x36b), region = 40 }
  0x37   : > { %s2879_s23 = sand.u32 1, %s2729_s19  }
  0x38   : > { %s2258_s25 = sshll.u32 %s2879_s23, 8  ;;  %s214_s26 = scalar_lea.sflag [#allocation3], %s2879_s23 }
  0x39   : > { %s2883_s28 = scalar_lea.vmem [#allocation2], %s2258_s25 }
  0x3a   : > { %2716 = dma.done.wait (%p2818_p6), %s214_s26, 4096  }
  0x3b   : > { %2718 = vsyncadd (%p2818_p6), %s214_s26, 4294963200  ;;  %v2742_v0 = vmov 0   ;;  %v246_v1 = vld [vmem:[%s2883_s28] sm:$0xff]  ;;  %v247_v2 = vld [vmem:[%s2883_s28 + $0x8] sm:$0xff]  ;;  %vm354_vm0 = vcmask 261120   ;;  %vm1463_vm1 = vcmask 523264  }
  0x3c   : > { %2512 = vset.pattern.permute.xlu1 %v2742_v0  ;;  %2511 = vset.pattern.permute.xlu0 %v2742_v0  ;;  %v250_v3 = vld [vmem:[%s2883_s28 + $0x20] sm:$0xff]  ;;  %v278_v4 = vpack.c.bf16 %v247_v2, %v246_v1  ;;  %v251_v5 = vld [vmem:[%s2883_s28 + $0x28] sm:$0xff]  ;;  %v248_v6 = vld [vmem:[%s2883_s28 + $0x10] sm:$0xff]  ;;  %vm1759_vm2 = vcmask 130112   ;;  %vm1766_vm3 = vcmask 195712   ;;  %vm1773_vm4 = vcmask 261312  }
  0x3d   : > { %v249_v7 = vld [vmem:[%s2883_s28 + $0x18] sm:$0xff]  ;;  %v280_v8 = vpack.c.bf16 %v251_v5, %v250_v3  ;;  %v252_v10 = vld [vmem:[%s2883_s28 + $0x30] sm:$0xff]  ;;  %v294_v12 = vld [vmem:[%s4238_s1] sm:$0xff]  ;;  %vm1780_vm5 = vcmask 326912   ;;  %vm1787_vm6 = vcmask 392512   ;;  %vm1794_vm7 = vcmask 458112  }
  0x3e   : > { %v279_v9 = vpack.c.bf16 %v249_v7, %v248_v6  ;;  %v253_v11 = vld [vmem:[%s2883_s28 + $0x38] sm:$0xff]  ;;  %2349 = vmatprep.subr.bf16.mxu0 %v278_v4  ;;  %v295_v14 = vld [vmem:[%s4238_s1 + $0x8] sm:$0xff]  ;;  %v296_v16 = vld [vmem:[%s4238_s1 + $0x10] sm:$0xff]  ;;  %vm1801_vm8 = vcmask 523712   ;;  %vm2076_vm9 = vcmask 1041409   ;;  %vm2078_vm10 = vcmask 1042434  }
  0x3f   : > { %v281_v13 = vpack.c.bf16 %v253_v11, %v252_v10  ;;  %2361 = vmatprep.subr.bf16.mxu1 %v280_v8  ;;  %2350 = vmatpush3.bf16.msra.mxu0 %v278_v4  ;;  %v2903_v15 = vpack.c.bf16 %v295_v14, %v294_v12  ;;  %v297_v17 = vld [vmem:[%s4238_s1 + $0x18] sm:$0xff]  ;;  %v298_v18 = vld [vmem:[%s4238_s1 + $0x20] sm:$0xff]  ;;  %v299_v19 = vld [vmem:[%s4238_s1 + $0x28] sm:$0xff]  ;;  %vm2080_vm11 = vcmask 1043459   ;;  %vm2082_vm12 = vcmask 1044484   ;;  %s2259_s8 = sshll.u32 %s2879_s23, 4 }
  0x40   : > { %2362 = vmatpush3.bf16.msra.mxu1 %v280_v8  ;;  %2351 = vmatprep.subr.bf16.mxu0 %v279_v9  ;;  %v254_v20 = vld [vmem:[%s2883_s28 + $0x40] sm:$0xff]  ;;  %v255_v21 = vld [vmem:[%s2883_s28 + $0x48] sm:$0xff]  ;;  %v2925_v25 = vpack.c.bf16 %v297_v17, %v296_v16  ;;  %v256_v27 = vld [vmem:[%s2883_s28 + $0x50] sm:$0xff]  ;;  %v2929_v29 = vpack.c.bf16 %v299_v19, %v298_v18  ;;  %vm2084_vm13 = vcmask 1045509   ;;  %vm2086_vm14 = vcmask 1046534   ;;  %s2300_s10 = sshll.u32 %s2796_s22, 8 }
  0x41   : > { %2363 = vmatprep.subr.bf16.mxu1 %v281_v13  ;;  %2353 = vmatprep.mubr.msk.bf16.mxu0 %vm354_vm0, %v2903_v15  ;;  %v282_v22 = vpack.c.bf16 %v255_v21, %v254_v20  ;;  %v258_v23 = vld [vmem:[%s2883_s28 + $0x60] sm:$0xff]  ;;  %v259_v24 = vld [vmem:[%s2883_s28 + $0x68] sm:$0xff]  ;;  %v257_v28 = vld [vmem:[%s2883_s28 + $0x58] sm:$0xff]  ;;  %vm2088_vm15 = vcmask 1047559   ;;  %s243_s11 = scalar_lea.vmem [#allocation5], %s2259_s8  ;;  %s4193_s26 = scalar_lea.hbm %s4242_s5, %s2300_s10 }
  0x42   : > { %2365 = vmatprep.mubr.msk.bf16.mxu1 %vm354_vm0, %v2903_v15  ;;  %v284_v26 = vpack.c.bf16 %v259_v24, %v258_v23  ;;  %v260_v30 = vld [vmem:[%s2883_s28 + $0x70] sm:$0xff]  ;;  %v261_v31 = vld [vmem:[%s2883_s28 + $0x78] sm:$0xff]  ;;  %v283_v32 = vpack.c.bf16 %v257_v28, %v256_v27  ;;  %v262_v35 = vld [vmem:[%s2883_s28 + $0x80] sm:$0xff]  ;;  %s2180_s13 = sshll.u32 %s243_s11, 4  ;;  %s2166_s29 = scalar_lea.sflag [#allocation4], %s2879_s23  ;;  %s4195_s13 = int_to_ptr.vmem [resolvable:$true] %s2180_s13 }
  0x43   : > { %2352 = vmatpush3.bf16.msra.mxu0 %v279_v9  ;;  %v300_v33 = vld [vmem:[%s4238_s1 + $0x30] sm:$0xff]  ;;  %v285_v34 = vpack.c.bf16 %v261_v31, %v260_v30  ;;  %v263_v36 = vld [vmem:[%s2883_s28 + $0x88] sm:$0xff]  ;;  %v301_v37 = vld [vmem:[%s4238_s1 + $0x38] sm:$0xff]  ;;  %s2671_s22 = scalar_lea.vmem %s4195_s13, 256  ;;  %p4452_p11 = scmp.ne.s32.totalorder %s4292_s30, 0 }
  0x44   : > { %2364 = vmatpush3.bf16.msra.mxu1 %v281_v13  ;;  %2373 = vmatprep.subr.bf16.mxu0 %v282_v22  ;;  %v266_v38 = vld [vmem:[%s2883_s28 + $0xa0] sm:$0xff]  ;;  %v267_v39 = vld [vmem:[%s2883_s28 + $0xa8] sm:$0xff]  ;;  %v308_v40 = vld [vmem:[%s4239_s2 + $0x10] sm:$0xff]  ;;  %v286_v41 = vpack.c.bf16 %v263_v36, %v262_v35  ;;  %v2957_v43 = vpack.c.bf16 %v301_v37, %v300_v33  ;;  %p2672_p6 = scmp.ne.s32.totalorder %s4195_s13, %s2671_s22  ;;  %s2744_s12 = smov [#allocation5]  }
  0x45   : > { %2385 = vmatprep.subr.bf16.mxu1 %v284_v26  ;;  %v306_v42 = vld [vmem:[%s4239_s2] sm:$0xff]  ;;  %v288_v44 = vpack.c.bf16 %v267_v39, %v266_v38  ;;  %326 = vperm.xlu1 %2512, %v308_v40   ;;  %v309_v45 = vld [vmem:[%s4239_s2 + $0x18] sm:$0xff]  ;;  %v307_v46 = vld [vmem:[%s4239_s2 + $0x8] sm:$0xff]  ;;  %s2675_s14 = sshll.u32 %s2744_s12, 4  ;;  %s2676_s14 = int_to_ptr.vmem [resolvable:$false] %s2675_s14 }
  0x46   : > { %2354 = vmatmul.mubr.msk.bf16.vlgmr.msra.gmra.mrb[0].mxu0 %vm354_vm0, %v2925_v25  ;;  %316 = vperm.xlu0 %2511, %v306_v42   ;;  %v311_v47 = vld [vmem:[%s4239_s2 + $0x28] sm:$0xff]  ;;  %v264_v48 = vld [vmem:[%s2883_s28 + $0x90] sm:$0xff]  ;;  %v265_v49 = vld [vmem:[%s2883_s28 + $0x98] sm:$0xff]  ;;  %p2673_p12 = pnand %p2672_p6, %p4452_p11  ;;  %s2677_s15 = scalar_lea.vmem %s2676_s14, 512 }
  0x47   : > { %2366 = vmatmul.mubr.msk.bf16.vlgmr.msra.gmra.mrb[0].mxu1 %vm354_vm0, %v2925_v25  ;;  %2357 = vmatprep.mubr.msk.bf16.mxu0 %vm354_vm0, %v2929_v29  ;;  %v310_v50 = vld [vmem:[%s4239_s2 + $0x20] sm:$0xff]  ;;  %v268_v51 = vld [vmem:[%s2883_s28 + $0xb0] sm:$0xff]  ;;  %v269_v52 = vld [vmem:[%s2883_s28 + $0xb8] sm:$0xff]  ;;  %v287_v53 = vpack.c.bf16 %v265_v49, %v264_v48  ;;  %p2678_p8 = scmp.lt.s32.totalorder %s4195_s13, %s2676_s14  ;;  %p2679_p10 = scmp.lt.s32.totalorder %s2677_s15, %s2671_s22 }
  0x48   : > { %2369 = vmatprep.mubr.msk.bf16.mxu1 %vm354_vm0, %v2929_v29  ;;  %2374 = vmatpush3.bf16.msra.mxu0 %v282_v22  ;;  %v289_v54 = vpack.c.bf16 %v269_v52, %v268_v51  ;;  %v270_v55 = vld [vmem:[%s2883_s28 + $0xc0] sm:$0xff]  ;;  %v271_v56 = vld [vmem:[%s2883_s28 + $0xc8] sm:$0xff]  ;;  %v313_v59 = vld [vmem:[%s4239_s2 + $0x38] sm:$0xff]  ;;  %p2674_p13 = pneg %p2673_p12 }
  0x49   : > { %2386 = vmatpush3.bf16.msra.mxu1 %v284_v26  ;;  %2375 = vmatprep.subr.bf16.mxu0 %v283_v32  ;;  %v274_v57 = vld [vmem:[%s2883_s28 + $0xe0] sm:$0xff]  ;;  %v275_v58 = vld [vmem:[%s2883_s28 + $0xe8] sm:$0xff]  ;;  %v312_v60 = vld [vmem:[%s4239_s2 + $0x30] sm:$0xff]  ;;  %v290_v61 = vpack.c.bf16 %v271_v56, %v270_v55  ;;  %p2680_p0 = por %p2679_p10, %p2678_p8 }
  0x4a   : > { %2387 = vmatprep.subr.bf16.mxu1 %v285_v34  ;;  %331 = vperm.xlu1 %2512, %v309_v45   ;;  %v292_v62 = vpack.c.bf16 %v275_v58, %v274_v57  ;;  %v272_v63 = vld [vmem:[%s2883_s28 + $0xd0] sm:$0xff]  ;;  %v273_v0 = vld [vmem:[%s2883_s28 + $0xd8] sm:$0xff] }
  0x4b   : > { %321 = vperm.xlu0 %2511, %v307_v46   ;;  %v276_v1 = vld [vmem:[%s2883_s28 + $0xf0] sm:$0xff]  ;;  %v277_v2 = vld [vmem:[%s2883_s28 + $0xf8] sm:$0xff]  ;;  %v291_v3 = vpack.c.bf16 %v273_v0, %v272_v63  ;;  %p2681_p2 = pnand %p2680_p0, %p2674_p13 }
  0x4c   : > { %2376 = vmatpush3.bf16.msra.mxu0 %v283_v32  ;;  %v293_v4 = vpack.c.bf16 %v277_v2, %v276_v1 }
  0x4d   : > { %2388 = vmatpush3.bf16.msra.mxu1 %v285_v34  ;;  %2397 = vmatprep.subr.bf16.mxu0 %v286_v41 }
  0x4e   : > { %2358 = vmatmul.mubr.msk.bf16.gmra.mrb[4].mxu0 %vm354_vm0, %v2957_v43  ;;  %2409 = vmatprep.subr.bf16.mxu1 %v288_v44 }
  0x4f   : > { %2370 = vmatmul.mubr.msk.bf16.gmra.mrb[4].mxu1 %vm354_vm0, %v2957_v43  ;;  %2377 = vmatprep.mubr.msk.bf16.mxu0 %vm354_vm0, %v2903_v15 }
  0x50   : > { %2389 = vmatprep.mubr.msk.bf16.mxu1 %vm354_vm0, %v2903_v15  ;;  %341 = vperm.xlu1 %2512, %v311_v47  }
  0x51   : > { %336 = vperm.xlu0 %2511, %v310_v50  }
  0x54   : > { %351 = vperm.xlu1 %2512, %v313_v59  }
  0x55   : > { %346 = vperm.xlu0 %2511, %v312_v60  }
  0x56   : > { %2378 = vmatmul.mubr.msk.bf16.vlgmr.msra.gmra.mrb[8].mxu0 %vm354_vm0, %v2925_v25 }
  0x57   : > { %2390 = vmatmul.mubr.msk.bf16.vlgmr.msra.gmra.mrb[8].mxu1 %vm354_vm0, %v2925_v25  ;;  %2381 = vmatprep.mubr.msk.bf16.mxu0 %vm354_vm0, %v2929_v29 }
  0x58   : > { %2393 = vmatprep.mubr.msk.bf16.mxu1 %vm354_vm0, %v2929_v29  ;;  %2398 = vmatpush3.bf16.msra.mxu0 %v286_v41 }
  0x59   : > { %2410 = vmatpush3.bf16.msra.mxu1 %v288_v44  ;;  %2399 = vmatprep.subr.bf16.mxu0 %v287_v53 }
  0x5a   : > { %2411 = vmatprep.subr.bf16.mxu1 %v289_v54 }
  0x5c   : > { %2400 = vmatpush3.bf16.msra.mxu0 %v287_v53 }
  0x5d   : > { %2412 = vmatpush3.bf16.msra.mxu1 %v289_v54  ;;  %2421 = vmatprep.subr.bf16.mxu0 %v290_v61 }
  0x5e   : > { %2382 = vmatmul.mubr.msk.bf16.gmra.mrb[12].mxu0 %vm354_vm0, %v2957_v43  ;;  %2433 = vmatprep.subr.bf16.mxu1 %v292_v62 }
  0x5f   : > { %2394 = vmatmul.mubr.msk.bf16.gmra.mrb[12].mxu1 %vm354_vm0, %v2957_v43  ;;  %2401 = vmatprep.mubr.msk.bf16.mxu0 %vm354_vm0, %v2903_v15 }
  0x60   : > { %2413 = vmatprep.mubr.msk.bf16.mxu1 %vm354_vm0, %v2903_v15 }
  0x66   : > { %2402 = vmatmul.mubr.msk.bf16.vlgmr.msra.gmra.mrb[16].mxu0 %vm354_vm0, %v2925_v25 }
  0x67   : > { %2414 = vmatmul.mubr.msk.bf16.vlgmr.msra.gmra.mrb[16].mxu1 %vm354_vm0, %v2925_v25  ;;  %2405 = vmatprep.mubr.msk.bf16.mxu0 %vm354_vm0, %v2929_v29 }
  0x68   : > { %2417 = vmatprep.mubr.msk.bf16.mxu1 %vm354_vm0, %v2929_v29  ;;  %2422 = vmatpush3.bf16.msra.mxu0 %v290_v61 }
  0x69   : > { %2434 = vmatpush3.bf16.msra.mxu1 %v292_v62  ;;  %2423 = vmatprep.subr.bf16.mxu0 %v291_v3 }
  0x6a   : > { %2435 = vmatprep.subr.bf16.mxu1 %v293_v4 }
  0x6c   : > { %2424 = vmatpush3.bf16.msra.mxu0 %v291_v3 }
  0x6d   : > { %2436 = vmatpush3.bf16.msra.mxu1 %v293_v4 }
  0x6e   : > { %2406 = vmatmul.mubr.msk.bf16.gmra.mrb[20].mxu0 %vm354_vm0, %v2957_v43 }
  0x6f   : > { %2418 = vmatmul.mubr.msk.bf16.gmra.mrb[20].mxu1 %vm354_vm0, %v2957_v43  ;;  %2425 = vmatprep.mubr.msk.bf16.mxu0 %vm354_vm0, %v2903_v15 }
  0x70   : > { %2437 = vmatprep.mubr.msk.bf16.mxu1 %vm354_vm0, %v2903_v15 }
  0x76   : > { %2426 = vmatmul.mubr.msk.bf16.vlgmr.msra.gmra.mrb[24].mxu0 %vm354_vm0, %v2925_v25 }
  0x77   : > { %2438 = vmatmul.mubr.msk.bf16.vlgmr.msra.gmra.mrb[24].mxu1 %vm354_vm0, %v2925_v25  ;;  %2429 = vmatprep.mubr.msk.bf16.mxu0 %vm354_vm0, %v2929_v29 }
  0x78   : > { %2441 = vmatprep.mubr.msk.bf16.mxu1 %vm354_vm0, %v2929_v29 }
  0x7e   : > { %2430 = vmatmul.mubr.msk.bf16.gmra.mrb[28].mxu0 %vm354_vm0, %v2957_v43 }
  0x7f   : > { %2442 = vmatmul.mubr.msk.bf16.gmra.mrb[28].mxu1 %vm354_vm0, %v2957_v43 }
  0xc4   : > { %v3043_v14 = vpop.permute.xlu1 %326 }
  0xc5   : > { %v3041_v5 = vpop.permute.xlu0 %316 }
  0xc9   : > { %v3051_v24 = vpop.permute.xlu1 %331 }
  0xca   : > { %v3045_v15 = vpop.permute.xlu0 %321  ;;  %4296 = vst [vmem:[#allocation9_spill] sm:$0xff] %v3051_v24 }
  0xcb   : > { %4295 = vst [vmem:[#allocation8_spill] sm:$0xff] %v3045_v15 }
  0xcf   : > { %v3101_v45 = vpop.permute.xlu1 %341 }
  0xd0   : > { %v3056_v26 = vpop.permute.xlu0 %336 }
  0xd1   : > { %4297 = vst [vmem:[#allocation10_spill] sm:$0xff] %v3056_v26 }
  0xd4   : > { %v3108_v49 = vpop.permute.xlu0 %346 }
  0xd5   : > { %4303 = vst [vmem:[#allocation16_spill] sm:$0xff] %v3108_v49 }
 0x119   : > { %v2355_v6 = vpop.f32.mrb[0].mxu0 }
 0x11a   : > { %v2367_v7 = vpop.f32.mrb[0].mxu1  ;;  %v401_v8 = vpop.f32.mrb[1].mxu0  ;;  %v3054_v25 = vadd.f32 %v2355_v6, %v3043_v14 }
 0x11b   : > { %v466_v9 = vpop.f32.mrb[1].mxu1  ;;  %v2356_v10 = vpop.f32.mrb[2].mxu0  ;;  %v3061_v28 = vadd.f32 %v2367_v7, %v3043_v14  ;;  %v3068_v31 = vadd.f32 %v401_v8, %v3041_v5 }
 0x11c   : > { %v2368_v11 = vpop.f32.mrb[2].mxu1  ;;  %v404_v12 = vpop.f32.mrb[3].mxu0  ;;  %v889_v34 = vmul.f32 %v3054_v25, %v3054_v25  ;;  %v3077_v35 = vadd.f32 %v466_v9, %v3041_v5  ;;  %v3084_v38 = vadd.f32 %v2356_v10, %v3051_v24 }
 0x11d   : > { %v469_v13 = vpop.f32.mrb[3].mxu1  ;;  %4298 = vst [vmem:[#allocation11_spill] sm:$0xff] %v3068_v31  ;;  %v897_v40 = vmul.f32 %v3061_v28, %v3061_v28  ;;  %v3091_v41 = vadd.f32 %v2368_v11, %v3051_v24  ;;  %v887_v42 = vmul.f32 %v3068_v31, %v3068_v31  ;;  %v3096_v43 = vadd.f32 %v404_v12, %v3045_v15  ;;  %v3148_v9 = vpop.permute.xlu1 %351 }
 0x11e   : > { %4299 = vst [vmem:[#allocation12_spill] sm:$0xff] %v3077_v35  ;;  %v3099_v44 = vadd.f32 %v469_v13, %v3045_v15  ;;  %v953_v46 = vmul.f32 %v889_v34, %v3054_v25  ;;  %v895_v47 = vmul.f32 %v3077_v35, %v3077_v35  ;;  %v890_v48 = vmul.f32 %v3084_v38, %v3084_v38 }
 0x11f   : > { %4300 = vst [vmem:[#allocation13_spill] sm:$0xff] %v3091_v41  ;;  %4301 = vst [vmem:[#allocation14_spill] sm:$0xff] %v3096_v43  ;;  %v961_v51 = vmul.f32 %v897_v40, %v3061_v28  ;;  %v898_v52 = vmul.f32 %v3091_v41, %v3091_v41  ;;  %v951_v56 = vmul.f32 %v887_v42, %v3068_v31 }
 0x120   : > { %4302 = vst [vmem:[#allocation15_spill] sm:$0xff] %v3099_v44  ;;  %v888_v57 = vmul.f32 %v3096_v43, %v3096_v43  ;;  %v896_v58 = vmul.f32 %v3099_v44, %v3099_v44  ;;  %v1017_v61 = vmul.f32 0.044715, %v953_v46  ;;  %v959_v62 = vmul.f32 %v895_v47, %v3077_v35  ;;  %4306 = vst [vmem:[#allocation19_spill] sm:$0xff] %v3148_v9 }
 0x121   : > { %v2359_v16 = vpop.f32.mrb[4].mxu0  ;;  %v954_v1 = vmul.f32 %v890_v48, %v3084_v38  ;;  %v1025_v6 = vmul.f32 0.044715, %v961_v51  ;;  %v962_v7 = vmul.f32 %v898_v52, %v3091_v41  ;;  %v1015_v10 = vmul.f32 0.044715, %v951_v56 }
 0x122   : > { %v2371_v17 = vpop.f32.mrb[4].mxu1  ;;  %v417_v18 = vpop.f32.mrb[5].mxu0  ;;  %v3116_v53 = vadd.f32 %v2359_v16, %v3108_v49  ;;  %v952_v11 = vmul.f32 %v888_v57, %v3096_v43  ;;  %v960_v12 = vmul.f32 %v896_v58, %v3099_v44  ;;  %v1081_v13 = vadd.f32 %v1017_v61, %v3054_v25 }
 0x123   : > { %v482_v19 = vpop.f32.mrb[5].mxu1  ;;  %v2360_v20 = vpop.f32.mrb[6].mxu0  ;;  %v3138_v2 = vadd.f32 %v2371_v17, %v3108_v49  ;;  %v3141_v3 = vadd.f32 %v417_v18, %v3056_v26  ;;  %v1023_v16 = vmul.f32 0.044715, %v959_v62  ;;  %v1018_v34 = vmul.f32 0.044715, %v954_v1 }
 0x124   : > { %v2372_v21 = vpop.f32.mrb[6].mxu1  ;;  %v3047_v22 = vpop.f32.mrb[7].mxu0  ;;  %4304 = vst [vmem:[#allocation17_spill] sm:$0xff] %v3116_v53  ;;  %v893_v8 = vmul.f32 %v3116_v53, %v3116_v53  ;;  %v3154_v17 = vadd.f32 %v482_v19, %v3056_v26  ;;  %v3157_v18 = vadd.f32 %v2360_v20, %v3148_v9  ;;  %v1089_v48 = vadd.f32 %v1025_v6, %v3061_v28 }
 0x125   : > { %v3049_v23 = vpop.f32.mrb[7].mxu1  ;;  %4305 = vst [vmem:[#allocation18_spill] sm:$0xff] %v3141_v3  ;;  %v901_v40 = vmul.f32 %v3138_v2, %v3138_v2  ;;  %v891_v42 = vmul.f32 %v3141_v3, %v3141_v3  ;;  %v3164_v46 = vadd.f32 %v2372_v21, %v3148_v9  ;;  %v1026_v51 = vmul.f32 0.044715, %v962_v7 }
 0x126   : > { %v957_v19 = vmul.f32 %v893_v8, %v3116_v53  ;;  %v3172_v20 = vadd.f32 %v3047_v22, %v3101_v45  ;;  %v3179_v57 = vadd.f32 %v1015_v10, %v3068_v31  ;;  %v1016_v21 = vmul.f32 0.044715, %v952_v11 }
 0x127   : > { %4307 = vst [vmem:[#allocation20_spill] sm:$0xff] %v3164_v46  ;;  %v1024_v58 = vmul.f32 0.044715, %v960_v12  ;;  %v3183_v61 = vadd.f32 %v3049_v23, %v3101_v45  ;;  %v3190_v22 = vadd.f32 %v1023_v16, %v3077_v35  ;;  %v899_v6 = vmul.f32 %v3154_v17, %v3154_v17 }
 0x128   : > { %4308 = vst [vmem:[#allocation21_spill] sm:$0xff] %v3172_v20  ;;  %v894_v7 = vmul.f32 %v3157_v18, %v3157_v18  ;;  %v1082_v11 = vadd.f32 %v1018_v34, %v3084_v38  ;;  %v965_v12 = vmul.f32 %v901_v40, %v3138_v2  ;;  %v955_v16 = vmul.f32 %v891_v42, %v3141_v3 }
 0x129   : > { %v3058_v27 = vpop.f32.mrb[8].mxu0  ;;  %v902_v35 = vmul.f32 %v3164_v46, %v3164_v46  ;;  %v3221_v34 = vadd.f32 %v1016_v21, %v3096_v43  ;;  %v3224_v40 = vadd.f32 %v1024_v58, %v3099_v44  ;;  %v900_v42 = vmul.f32 %v3183_v61, %v3183_v61 }
 0x12a   : > { %v3063_v29 = vpop.f32.mrb[8].mxu1  ;;  %v3065_v30 = vpop.f32.mrb[9].mxu0  ;;  %v3198_v8 = vadd.f32 %v3058_v27, %v3043_v14  ;;  %v1021_v27 = vmul.f32 0.044715, %v957_v19  ;;  %v963_v19 = vmul.f32 %v899_v6, %v3154_v17  ;;  %v1029_v58 = vmul.f32 0.044715, %v965_v12 }
 0x12b   : > { %v3070_v32 = vpop.f32.mrb[9].mxu1  ;;  %v3072_v33 = vpop.f32.mrb[10].mxu0  ;;  %4317 = vst [vmem:[#allocation30_spill] sm:$0xff] %v3224_v40  ;;  %v1019_v44 = vmul.f32 0.044715, %v955_v16 }
 0x12c   : > { %v3079_v36 = vpop.f32.mrb[10].mxu1  ;;  %v3081_v37 = vpop.f32.mrb[11].mxu0  ;;  %4312 = vst [vmem:[#allocation25_spill] sm:$0xff] %v3198_v8  ;;  %v3238_v21 = vadd.f32 %v3070_v32, %v3041_v5  ;;  %v3243_v40 = vadd.f32 %v3072_v33, %v3051_v24  ;;  %v3248_v6 = vadd.f32 %v1021_v27, %v3116_v53  ;;  %v1153_v32 = vmul.f32 0.7978846, %v1089_v48 }
 0x12d   : > { %v3086_v39 = vpop.f32.mrb[11].mxu1  ;;  %v3262_v16 = vadd.f32 %v3079_v36, %v3051_v24  ;;  %v1145_v27 = vmul.f32 0.7978846, %v1081_v13  ;;  %v1027_v36 = vmul.f32 0.044715, %v963_v19 }
 0x12e   : > { %4319 = vst [vmem:[#allocation32_spill] sm:$0xff] %v3238_v21  ;;  %4320 = vst [vmem:[#allocation33_spill] sm:$0xff] %v3243_v40  ;;  %2513 = vtanh.f32 %v1153_v32  ;;  %v3289_v32 = vadd.f32 %v3086_v39, %v3045_v15  ;;  %v1146_v19 = vmul.f32 0.7978846, %v1082_v11 }
 0x12f   : > { %4324 = vst [vmem:[#allocation37_spill] sm:$0xff] %v3262_v16  ;;  %2515 = vtanh.f32 %v1145_v27  ;;  %v3301_v39 = vadd.f32 %v1027_v36, %v3154_v17 }
 0x130   : > { %4331 = vst [vmem:[#allocation44_spill] sm:$0xff] %v3289_v32  ;;  %2517 = vtanh.f32 %v1146_v19 }
 0x131   : > { %v3110_v50 = vpop.f32.mrb[12].mxu0 }
 0x132   : > { %v3118_v54 = vpop.f32.mrb[12].mxu1  ;;  %v3120_v55 = vpop.f32.mrb[13].mxu0 }
 0x133   : > { %v3127_v59 = vpop.f32.mrb[13].mxu1  ;;  %v3129_v60 = vpop.f32.mrb[14].mxu0 }
 0x134   : > { %v3132_v63 = vpop.f32.mrb[14].mxu1  ;;  %v3134_v0 = vpop.f32.mrb[15].mxu0 }
 0x135   : > { %v3143_v4 = vpop.f32.mrb[15].mxu1 }
 0x139   : > { %v3166_v47 = vpop.f32.mrb[16].mxu0 }
 0x13a   : > { %v3174_v52 = vpop.f32.mrb[16].mxu1  ;;  %v3176_v56 = vpop.f32.mrb[17].mxu0 }
 0x13b   : > { %4309 = vst [vmem:[#allocation22_spill] sm:$0xff] %v3176_v56  ;;  %v3185_v62 = vpop.f32.mrb[17].mxu1  ;;  %v3187_v1 = vpop.f32.mrb[18].mxu0 }
 0x13c   : > { %4310 = vst [vmem:[#allocation23_spill] sm:$0xff] %v3185_v62  ;;  %4311 = vst [vmem:[#allocation24_spill] sm:$0xff] %v3187_v1  ;;  %v3200_v10 = vpop.f32.mrb[18].mxu1  ;;  %v3202_v23 = vpop.f32.mrb[19].mxu0  ;;  %v3212_v62 = vadd.f32 %v1026_v51, %v3091_v41  ;;  %v3230_v51 = vadd.f32 %v3065_v30, %v3041_v5  ;;  %v958_v41 = vmul.f32 %v894_v7, %v3157_v18 }
 0x13d   : > { %4313 = vst [vmem:[#allocation26_spill] sm:$0xff] %v3200_v10  ;;  %4314 = vst [vmem:[#allocation27_spill] sm:$0xff] %v3202_v23  ;;  %v3209_v1 = vpop.f32.mrb[19].mxu1  ;;  %v892_v10 = vmul.f32 %v3172_v20, %v3172_v20  ;;  %v3218_v23 = vadd.f32 %v3063_v29, %v3043_v14  ;;  %v905_v29 = vmul.f32 %v3198_v8, %v3198_v8 }
 0x13e   : > { %4315 = vst [vmem:[#allocation28_spill] sm:$0xff] %v3209_v1  ;;  %4318 = vst [vmem:[#allocation31_spill] sm:$0xff] %v3230_v51  ;;  %v966_v1 = vmul.f32 %v902_v35, %v3164_v46  ;;  %v964_v35 = vmul.f32 %v900_v42, %v3183_v61  ;;  %v903_v33 = vmul.f32 %v3230_v51, %v3230_v51  ;;  %v1022_v13 = vmul.f32 0.044715, %v958_v41 }
 0x13f   : > { %4316 = vst [vmem:[#allocation29_spill] sm:$0xff] %v3218_v23  ;;  %v956_v7 = vmul.f32 %v892_v10, %v3172_v20  ;;  %v913_v43 = vmul.f32 %v3218_v23, %v3218_v23  ;;  %v969_v48 = vmul.f32 %v905_v29, %v3198_v8  ;;  %v3273_v42 = vadd.f32 %v3081_v37, %v3045_v15 }
 0x140   : > { %v3284_v29 = vadd.f32 %v1029_v58, %v3138_v2  ;;  %v1030_v24 = vmul.f32 0.044715, %v966_v1  ;;  %v914_v41 = vmul.f32 %v3262_v16, %v3262_v16  ;;  %v967_v27 = vmul.f32 %v903_v33, %v3230_v51 }
 0x141   : > { %v3245_v30 = vpop.f32.mrb[20].mxu0  ;;  %4327 = vst [vmem:[#allocation40_spill] sm:$0xff] %v3273_v42  ;;  %v977_v37 = vmul.f32 %v913_v43, %v3218_v23  ;;  %v1033_v56 = vmul.f32 0.044715, %v969_v48  ;;  %v904_v1 = vmul.f32 %v3273_v42, %v3273_v42  ;;  %v3298_v43 = vadd.f32 %v1019_v44, %v3141_v3 }
 0x142   : > { %4321 = vst [vmem:[#allocation34_spill] sm:$0xff] %v3245_v30  ;;  %v3253_v31 = vpop.f32.mrb[20].mxu1  ;;  %v3255_v12 = vpop.f32.mrb[21].mxu0  ;;  %v3307_v11 = vadd.f32 %v1022_v13, %v3157_v18  ;;  %v912_v33 = vmul.f32 %v3289_v32, %v3289_v32  ;;  %v978_v13 = vmul.f32 %v914_v41, %v3262_v16 }
 0x143   : > { %4322 = vst [vmem:[#allocation35_spill] sm:$0xff] %v3253_v31  ;;  %4323 = vst [vmem:[#allocation36_spill] sm:$0xff] %v3255_v12  ;;  %v3264_v53 = vpop.f32.mrb[21].mxu1  ;;  %v3266_v10 = vpop.f32.mrb[22].mxu0  ;;  %v911_v31 = vmul.f32 %v3238_v21, %v3238_v21 }
 0x144   : > { %4325 = vst [vmem:[#allocation38_spill] sm:$0xff] %v3264_v53  ;;  %4326 = vst [vmem:[#allocation39_spill] sm:$0xff] %v3266_v10  ;;  %v3275_v12 = vpop.f32.mrb[22].mxu1  ;;  %v3277_v30 = vpop.f32.mrb[23].mxu0  ;;  %v906_v53 = vmul.f32 %v3243_v40, %v3243_v40 }
 0x145   : > { %4328 = vst [vmem:[#allocation41_spill] sm:$0xff] %v3275_v12  ;;  %4329 = vst [vmem:[#allocation42_spill] sm:$0xff] %v3277_v30  ;;  %v3281_v10 = vpop.f32.mrb[23].mxu1  ;;  %v1020_v12 = vmul.f32 0.044715, %v956_v7 }
 0x146   : > { %4330 = vst [vmem:[#allocation43_spill] sm:$0xff] %v3281_v10  ;;  %v1028_v30 = vmul.f32 0.044715, %v964_v35  ;;  %v975_v10 = vmul.f32 %v911_v31, %v3238_v21  ;;  %v970_v58 = vmul.f32 %v906_v53, %v3243_v40  ;;  %v3310_v35 = vadd.f32 %v1030_v24, %v3164_v46 }
 0x147   : > { %v1041_v31 = vmul.f32 0.044715, %v977_v37  ;;  %v3319_v53 = vadd.f32 %v1020_v12, %v3172_v20  ;;  %v3327_v24 = vadd.f32 %v3110_v50, %v3108_v49  ;;  %v3334_v46 = vadd.f32 %v1033_v56, %v3198_v8 }
 0x148   : > { %v3322_v36 = vadd.f32 %v1028_v30, %v3183_v61  ;;  %v968_v12 = vmul.f32 %v904_v1, %v3273_v42  ;;  %v1034_v41 = vmul.f32 0.044715, %v970_v58  ;;  %v3343_v50 = vadd.f32 %v3118_v54, %v3108_v49 }
 0x149   : > { %v3304_v7 = vpop.f32.mrb[24].mxu0  ;;  %4334 = vst [vmem:[#allocation47_spill] sm:$0xff] %v3327_v24  ;;  %v1143_v56 = vmul.f32 0.7978846, %v3179_v57  ;;  %v976_v1 = vmul.f32 %v912_v33, %v3289_v32  ;;  %v1144_v58 = vmul.f32 0.7978846, %v3221_v34  ;;  %v3362_v57 = vadd.f32 %v3127_v59, %v3056_v26 }
 0x14a   : > { %v3314_v44 = vpop.f32.mrb[24].mxu1  ;;  %v3316_v48 = vpop.f32.mrb[25].mxu0  ;;  %4339 = vst [vmem:[#allocation52_spill] sm:$0xff] %v3343_v50  ;;  %v1032_v59 = vmul.f32 0.044715, %v968_v12 }
 0x14b   : > { %4332 = vst [vmem:[#allocation45_spill] sm:$0xff] %v3314_v44  ;;  %4333 = vst [vmem:[#allocation46_spill] sm:$0xff] %v3316_v48  ;;  %v3329_v37 = vpop.f32.mrb[25].mxu1  ;;  %v3331_v19 = vpop.f32.mrb[26].mxu0  ;;  %v1031_v48 = vmul.f32 0.044715, %v967_v27  ;;  %v3353_v27 = vadd.f32 %v1041_v31, %v3218_v23  ;;  %2519 = vtanh.f32 %v1143_v56  ;;  %v3366_v31 = vadd.f32 %v3129_v60, %v3148_v9 }
 0x14c   : > { %4335 = vst [vmem:[#allocation48_spill] sm:$0xff] %v3329_v37  ;;  %4336 = vst [vmem:[#allocation49_spill] sm:$0xff] %v3331_v19  ;;  %v1039_v44 = vmul.f32 0.044715, %v975_v10  ;;  %v3337_v20 = vpop.f32.mrb[26].mxu1  ;;  %v3339_v30 = vpop.f32.mrb[27].mxu0  ;;  %v3347_v37 = vadd.f32 %v3120_v55, %v3056_v26  ;;  %v909_v55 = vmul.f32 %v3327_v24, %v3327_v24  ;;  %2521 = vtanh.f32 %v1144_v58 }
 0x14d   : > { %4337 = vst [vmem:[#allocation50_spill] sm:$0xff] %v3337_v20  ;;  %4338 = vst [vmem:[#allocation51_spill] sm:$0xff] %v3339_v30  ;;  %v3350_v8 = vpop.f32.mrb[27].mxu1  ;;  %v2514_v10 = vpop.eup %2513  ;;  %v1151_v30 = vmul.f32 0.7978846, %v3190_v22  ;;  %v917_v22 = vmul.f32 %v3343_v50, %v3343_v50  ;;  %v3375_v56 = vadd.f32 %v1031_v48, %v3230_v51  ;;  %v3379_v60 = vadd.f32 %v3132_v63, %v3148_v9 }
 0x14e   : > { %4340 = vst [vmem:[#allocation53_spill] sm:$0xff] %v3347_v37  ;;  %4341 = vst [vmem:[#allocation54_spill] sm:$0xff] %v3350_v8  ;;  %v2516_v54 = vpop.eup %2515  ;;  %v1042_v20 = vmul.f32 0.044715, %v978_v13  ;;  %v1281_v19 = vadd.f32 1.0, %v2514_v10  ;;  %v907_v34 = vmul.f32 %v3347_v37, %v3347_v37  ;;  %v915_v63 = vmul.f32 %v3362_v57, %v3362_v57 }
 0x14f   : > { %4342 = vst [vmem:[#allocation55_spill] sm:$0xff] %v3362_v57  ;;  %4343 = vst [vmem:[#allocation56_spill] sm:$0xff] %v3366_v31  ;;  %v1273_v33 = vadd.f32 1.0, %v2516_v54  ;;  %2523 = vtanh.f32 %v1151_v30  ;;  %v2518_v8 = vpop.eup %2517  ;;  %v1040_v3 = vmul.f32 0.044715, %v976_v1  ;;  %v3388_v30 = vadd.f32 %v3134_v0, %v3101_v45 }
 0x150   : > { %v1345_v13 = vmul.f32 0.5, %v1281_v19  ;;  %4345 = vst [vmem:[#allocation58_spill] sm:$0xff] %v3379_v60  ;;  %v973_v19 = vmul.f32 %v909_v55, %v3327_v24  ;;  %v981_v0 = vmul.f32 %v917_v22, %v3343_v50  ;;  %v3414_v51 = vadd.f32 %v1039_v44, %v3238_v21 }
 0x151   : > { %v3372_v10 = vpop.f32.mrb[28].mxu0  ;;  %v1337_v54 = vmul.f32 0.5, %v1273_v33  ;;  %4348 = vst [vmem:[#allocation61_spill] sm:$0xff] %v3388_v30  ;;  %v910_v33 = vmul.f32 %v3366_v31, %v3366_v31  ;;  %v3428_v44 = vadd.f32 %v1032_v59, %v3273_v42 }
 0x152   : > { %4344 = vst [vmem:[#allocation57_spill] sm:$0xff] %v3372_v10  ;;  %v3381_v58 = vpop.f32.mrb[28].mxu1  ;;  %v3383_v23 = vpop.f32.mrb[29].mxu0  ;;  %v1409_v48 = vmul.f32 %v1345_v13, %v3061_v28  ;;  %v971_v28 = vmul.f32 %v907_v34, %v3347_v37  ;;  %v3408_v13 = vadd.f32 %v3143_v4, %v3101_v45  ;;  %v3420_v34 = vadd.f32 %v1034_v41, %v3243_v40 }
 0x153   : > { %4346 = vst [vmem:[#allocation59_spill] sm:$0xff] %v3381_v58  ;;  %4347 = vst [vmem:[#allocation60_spill] sm:$0xff] %v3383_v23  ;;  %v3391_v12 = vpop.f32.mrb[29].mxu1  ;;  %v3393_v10 = vpop.f32.mrb[30].mxu0  ;;  %v1401_v1 = vmul.f32 %v1337_v54, %v3054_v25  ;;  %v1274_v23 = vadd.f32 1.0, %v2518_v8  ;;  %v918_v25 = vmul.f32 %v3379_v60, %v3379_v60  ;;  %v3423_v4 = vadd.f32 %v1042_v20, %v3262_v16  ;;  %v4365_v16 = vld [vmem:[#allocation26_spill] sm:$0xff] }
 0x154   : > { %4349 = vst [vmem:[#allocation62_spill] sm:$0xff] %v3391_v12  ;;  %4350 = vst [vmem:[#allocation63_spill] sm:$0xff] %v3393_v10  ;;  %v3400_v55 = vpop.f32.mrb[30].mxu1  ;;  %v3402_v58 = vpop.f32.mrb[31].mxu0  ;;  %v1494_v10 = vsel %vm1463_vm1, %v1409_v48, 0.0  ;;  %v908_v48 = vmul.f32 %v3388_v30, %v3388_v30  ;;  %v3434_v41 = vadd.f32 %v1040_v3, %v3289_v32 }
 0x155   : > { %4351 = vst [vmem:[#allocation64_spill] sm:$0xff] %v3400_v55  ;;  %4352 = vst [vmem:[#allocation65_spill] sm:$0xff] %v3402_v58  ;;  %v3411_v12 = vpop.f32.mrb[31].mxu1  ;;  %1495 = vadd.xlane.f32.xlu0 %v1494_v10  ;;  %v1470_v8 = vsel %vm1463_vm1, %v1401_v1, 0.0  ;;  %v1338_v22 = vmul.f32 0.5, %v1274_v23  ;;  %v974_v10 = vmul.f32 %v910_v33, %v3366_v31  ;;  %v2520_v1 = vpop.eup %2519 }
 0x156   : > { %4353 = vst [vmem:[#allocation66_spill] sm:$0xff] %v3408_v13  ;;  %4354 = vst [vmem:[#allocation67_spill] sm:$0xff] %v3411_v12  ;;  %v1037_v54 = vmul.f32 0.044715, %v973_v19  ;;  %1471 = vadd.xlane.f32.xlu1 %v1470_v8  ;;  %v979_v12 = vmul.f32 %v915_v63, %v3362_v57  ;;  %v1045_v20 = vmul.f32 0.044715, %v981_v0  ;;  %v916_v19 = vmul.f32 %v3408_v13, %v3408_v13  ;;  %v2522_v55 = vpop.eup %2521 }
 0x157   : > { %v1402_v23 = vmul.f32 %v1338_v22, %v3084_v38  ;;  %v1035_v58 = vmul.f32 0.044715, %v971_v28  ;;  %v982_v8 = vmul.f32 %v918_v25, %v3379_v60  ;;  %v1271_v42 = vadd.f32 1.0, %v2520_v1  ;;  %v4356_v1 = vld [vmem:[#allocation22_spill] sm:$0xff] }
 0x158   : > { %v1149_v63 = vmul.f32 0.7978846, %v3248_v6  ;;  %v3442_v38 = vadd.f32 %v1037_v54, %v3327_v24  ;;  %v972_v3 = vmul.f32 %v908_v48, %v3388_v30  ;;  %v3447_v0 = vadd.f32 %v3166_v47, %v3043_v14 }
 0x159   : > { %v1473_v59 = vsel %vm1463_vm1, %v1402_v23, 0.0  ;;  %v2524_v33 = vpop.eup %2523  ;;  %v1272_v28 = vadd.f32 1.0, %v2522_v55  ;;  %v1043_v22 = vmul.f32 0.044715, %v979_v12  ;;  %v1038_v32 = vmul.f32 0.044715, %v974_v10 }
 0x15a   : > { %4355 = vst [vmem:[#allocation68_spill] sm:$0xff] %v3442_v38  ;;  %1474 = vadd.xlane.f32.xlu1 %v1473_v59  ;;  %v1335_v25 = vmul.f32 0.5, %v1271_v42  ;;  %v1279_v40 = vadd.f32 1.0, %v2524_v33  ;;  %v3451_v23 = vadd.f32 %v3174_v52, %v3043_v14  ;;  %2525 = vtanh.f32 %v1149_v63  ;;  %v4358_v59 = vld [vmem:[#allocation11_spill] sm:$0xff]  ;;  %v4359_v10 = vld [vmem:[#allocation14_spill] sm:$0xff] }
 0x15b   : > { %v1336_v6 = vmul.f32 0.5, %v1272_v28  ;;  %v1154_v54 = vmul.f32 0.7978846, %v3212_v62  ;;  %v980_v48 = vmul.f32 %v916_v19, %v3408_v13  ;;  %v3457_v47 = vadd.f32 %v4356_v1, %v3041_v5  ;;  %v4360_v63 = vld [vmem:[#allocation23_spill] sm:$0xff]  ;;  %v4361_v19 = vld [vmem:[#allocation9_spill] sm:$0xff]  ;;  %v4362_v28 = vld [vmem:[#allocation24_spill] sm:$0xff] }
 0x15c   : > { %v1399_v55 = vmul.f32 %v1335_v25, %v4358_v59  ;;  %v1343_v12 = vmul.f32 0.5, %v1279_v40  ;;  %v921_v42 = vmul.f32 %v3447_v0, %v3447_v0  ;;  %v1155_v52 = vmul.f32 0.7978846, %v3301_v39  ;;  %v4363_v25 = vld [vmem:[#allocation12_spill] sm:$0xff]  ;;  %v4364_v39 = vld [vmem:[#allocation30_spill] sm:$0xff] }
 0x15d   : > { %4357 = vst [vmem:[#allocation22_spill] sm:$0xff] %v3457_v47  ;;  %v1400_v33 = vmul.f32 %v1336_v6, %v4359_v10  ;;  %2527 = vtanh.f32 %v1154_v54  ;;  %v3466_v62 = vadd.f32 %v4360_v63, %v3041_v5  ;;  %v3470_v24 = vadd.f32 %v4362_v28, %v4361_v19  ;;  %v4367_v28 = vld [vmem:[#allocation28_spill] sm:$0xff] }
 0x15e   : > { %v1464_v1 = vsel %vm1463_vm1, %v1399_v55, 0.0  ;;  %v1407_v40 = vmul.f32 %v1343_v12, %v4363_v25  ;;  %v929_v59 = vmul.f32 %v3451_v23, %v3451_v23  ;;  %2529 = vtanh.f32 %v1155_v52 }
 0x15f   : > { %1465 = vadd.xlane.f32.xlu0 %v1464_v1  ;;  %v1467_v6 = vsel %vm1463_vm1, %v1400_v33, 0.0  ;;  %v1152_v54 = vmul.f32 0.7978846, %v4364_v39  ;;  %v1046_v10 = vmul.f32 0.044715, %v982_v8  ;;  %v3480_v21 = vadd.f32 %v4365_v16, %v4361_v19 }
 0x160   : > { %v1036_v63 = vmul.f32 0.044715, %v972_v3  ;;  %v3484_v55 = vadd.f32 %v4367_v28, %v3045_v15  ;;  %1468 = vadd.xlane.f32.xlu1 %v1467_v6  ;;  %v3487_v12 = vadd.f32 %v1045_v20, %v3343_v50  ;;  %v3490_v1 = vadd.f32 %v1035_v58, %v3347_v37  ;;  %v4375_v6 = vld [vmem:[#allocation27_spill] sm:$0xff] }
 0x161   : > { %4366 = vst [vmem:[#allocation11_spill] sm:$0xff] %v3480_v21  ;;  %v3493_v33 = vadd.f32 %v1043_v22, %v3362_v57  ;;  %2531 = vtanh.f32 %v1152_v54  ;;  %v1044_v8 = vmul.f32 0.044715, %v980_v48  ;;  %v985_v3 = vmul.f32 %v921_v42, %v3447_v0  ;;  %v4376_v54 = vld [vmem:[#allocation34_spill] sm:$0xff] }
 0x162   : > { %4368 = vst [vmem:[#allocation14_spill] sm:$0xff] %v3484_v55  ;;  %4369 = vst [vmem:[#allocation23_spill] sm:$0xff] %v3487_v12  ;;  %v919_v16 = vmul.f32 %v3457_v47, %v3457_v47  ;;  %v1488_v52 = vsel %vm1463_vm1, %v1407_v40, 0.0  ;;  %v3500_v25 = vadd.f32 %v1038_v32, %v3366_v31  ;;  %v993_v20 = vmul.f32 %v929_v59, %v3451_v23 }
 0x163   : > { %4370 = vst [vmem:[#allocation24_spill] sm:$0xff] %v3490_v1  ;;  %4371 = vst [vmem:[#allocation12_spill] sm:$0xff] %v3493_v33  ;;  %v927_v58 = vmul.f32 %v3466_v62, %v3466_v62  ;;  %v922_v22 = vmul.f32 %v3470_v24, %v3470_v24  ;;  %1489 = vadd.xlane.f32.xlu0 %v1488_v52  ;;  %v3508_v48 = vadd.f32 %v1046_v10, %v3379_v60  ;;  %v4377_v10 = vld [vmem:[#allocation35_spill] sm:$0xff] }
 0x164   : > { %4372 = vst [vmem:[#allocation30_spill] sm:$0xff] %v3500_v25  ;;  %v3511_v42 = vadd.f32 %v1036_v63, %v3388_v30  ;;  %v930_v40 = vmul.f32 %v3480_v21, %v3480_v21  ;;  %v928_v32 = vmul.f32 %v3484_v55, %v3484_v55  ;;  %v2526_v59 = vpop.eup %2525  ;;  %v3519_v39 = vadd.f32 %v4375_v6, %v3045_v15  ;;  %v4379_v63 = vld [vmem:[#allocation36_spill] sm:$0xff] }
 0x165   : > { %4373 = vst [vmem:[#allocation26_spill] sm:$0xff] %v3508_v48  ;;  %v3523_v28 = vadd.f32 %v4376_v54, %v3108_v49  ;;  %v3527_v52 = vadd.f32 %v4377_v10, %v3108_v49  ;;  %v3531_v60 = vadd.f32 %v4379_v63, %v3056_v26  ;;  %v3534_v31 = vadd.f32 %v1044_v8, %v3408_v13  ;;  %v4382_v10 = vld [vmem:[#allocation38_spill] sm:$0xff] }
 0x166   : > { %4374 = vst [vmem:[#allocation28_spill] sm:$0xff] %v3511_v42  ;;  %v1049_v30 = vmul.f32 0.044715, %v985_v3  ;;  %v983_v57 = vmul.f32 %v919_v16, %v3457_v47  ;;  %v1277_v6 = vadd.f32 1.0, %v2526_v59  ;;  %v1057_v37 = vmul.f32 0.044715, %v993_v20 }
 0x167   : > { %4378 = vst [vmem:[#allocation27_spill] sm:$0xff] %v3527_v52  ;;  %4380 = vst [vmem:[#allocation34_spill] sm:$0xff] %v3531_v60  ;;  %v2528_v50 = vpop.eup %2527  ;;  %v991_v54 = vmul.f32 %v927_v58, %v3466_v62  ;;  %v986_v48 = vmul.f32 %v922_v22, %v3470_v24  ;;  %v3541_v49 = vadd.f32 %v4382_v10, %v3056_v26  ;;  %v4384_v59 = vld [vmem:[#allocation39_spill] sm:$0xff]  ;;  %v4387_v42 = vld [vmem:[#allocation41_spill] sm:$0xff]  ;;  %v1150_v12 = vmul.f32 0.7978846, %v3307_v11 }
 0x168   : > { %4381 = vst [vmem:[#allocation35_spill] sm:$0xff] %v3534_v31  ;;  %v994_v63 = vmul.f32 %v930_v40, %v3480_v21  ;;  %v992_v25 = vmul.f32 %v928_v32, %v3484_v55  ;;  %v1341_v8 = vmul.f32 0.5, %v1277_v6  ;;  %v1282_v13 = vadd.f32 1.0, %v2528_v50  ;;  %v2530_v3 = vpop.eup %2529  ;;  %v4386_v32 = vld [vmem:[#allocation17_spill] sm:$0xff] }
 0x169   : > { %4383 = vst [vmem:[#allocation36_spill] sm:$0xff] %v3541_v49  ;;  %v920_v16 = vmul.f32 %v3519_v39, %v3519_v39  ;;  %v925_v20 = vmul.f32 %v3523_v28, %v3523_v28  ;;  %v933_v58 = vmul.f32 %v3527_v52, %v3527_v52  ;;  %v923_v22 = vmul.f32 %v3531_v60, %v3531_v60 }
 0x16a   : > { %v3555_v40 = vadd.f32 %v4384_v59, %v3148_v9  ;;  %v1405_v6 = vmul.f32 %v1341_v8, %v4386_v32  ;;  %v1346_v50 = vmul.f32 0.5, %v1282_v13  ;;  %v1283_v10 = vadd.f32 1.0, %v2530_v3  ;;  %v4389_v59 = vld [vmem:[#allocation13_spill] sm:$0xff]  ;;  %v4390_v13 = vld [vmem:[#allocation42_spill] sm:$0xff] }
 0x16b   : > { %v2532_v26 = vpop.eup %2531  ;;  %v931_v31 = vmul.f32 %v3541_v49, %v3541_v49  ;;  %v3562_v33 = vadd.f32 %v4387_v42, %v3148_v9  ;;  %v1157_v15 = vmul.f32 0.7978846, %v3284_v29  ;;  %v3570_v3 = vadd.f32 %v4390_v13, %v3101_v45 }
 0x16c   : > { %4385 = vst [vmem:[#allocation38_spill] sm:$0xff] %v3555_v40  ;;  %v1482_v1 = vsel %vm1463_vm1, %v1405_v6, 0.0  ;;  %v1410_v38 = vmul.f32 %v1346_v50, %v4389_v59  ;;  %v1347_v19 = vmul.f32 0.5, %v1283_v10  ;;  %v1280_v8 = vadd.f32 1.0, %v2532_v26  ;;  %v4392_v50 = vld [vmem:[#allocation43_spill] sm:$0xff] }
 0x16d   : > { %4388 = vst [vmem:[#allocation39_spill] sm:$0xff] %v3562_v33  ;;  %4391 = vst [vmem:[#allocation17_spill] sm:$0xff] %v3570_v3  ;;  %1483 = vadd.xlane.f32.xlu1 %v1482_v1  ;;  %2533 = vtanh.f32 %v1150_v12  ;;  %v1156_v32 = vmul.f32 0.7978846, %v3322_v36  ;;  %v1147_v42 = vmul.f32 0.7978846, %v3298_v43  ;;  %v984_v6 = vmul.f32 %v920_v16, %v3519_v39 }
 0x16e   : > { %v1497_v11 = vsel %vm1463_vm1, %v1410_v38, 0.0  ;;  %v1411_v29 = vmul.f32 %v1347_v19, %v3154_v17  ;;  %v1344_v9 = vmul.f32 0.5, %v1280_v8  ;;  %2535 = vtanh.f32 %v1157_v15  ;;  %v4394_v12 = vld [vmem:[#allocation15_spill] sm:$0xff] }
 0x16f   : > { %v989_v26 = vmul.f32 %v925_v20, %v3523_v28  ;;  %v3580_v10 = vadd.f32 %v4392_v50, %v3101_v45  ;;  %1498 = vadd.xlane.f32.xlu0 %v1497_v11  ;;  %2537 = vtanh.f32 %v1156_v32  ;;  %v997_v36 = vmul.f32 %v933_v58, %v3527_v52 }
 0x170   : > { %v1500_v43 = vsel %vm1463_vm1, %v1411_v29, 0.0  ;;  %v1408_v38 = vmul.f32 %v1344_v9, %v4394_v12  ;;  %2539 = vtanh.f32 %v1147_v42  ;;  %v1047_v17 = vmul.f32 0.044715, %v983_v57 }
 0x171   : > { %4393 = vst [vmem:[#allocation41_spill] sm:$0xff] %v3580_v10  ;;  %v987_v15 = vmul.f32 %v923_v22, %v3531_v60  ;;  %v995_v19 = vmul.f32 %v931_v31, %v3541_v49  ;;  %v926_v1 = vmul.f32 %v3555_v40, %v3555_v40  ;;  %1501 = vadd.xlane.f32.xlu1 %v1500_v43  ;;  %v1055_v16 = vmul.f32 0.044715, %v991_v54 }
 0x172   : > { %v934_v20 = vmul.f32 %v3562_v33, %v3562_v33  ;;  %v924_v58 = vmul.f32 %v3570_v3, %v3570_v3  ;;  %v1491_v59 = vsel %vm1463_vm1, %v1408_v38, 0.0  ;;  %v1050_v9 = vmul.f32 0.044715, %v986_v48 }
 0x173   : > { %v1058_v8 = vmul.f32 0.044715, %v994_v63  ;;  %v1056_v57 = vmul.f32 0.044715, %v992_v25  ;;  %v932_v22 = vmul.f32 %v3580_v10, %v3580_v10  ;;  %1492 = vadd.xlane.f32.xlu0 %v1491_v59  ;;  %v3597_v31 = vadd.f32 %v1049_v30, %v3447_v0 }
 0x174   : > { %v1048_v13 = vmul.f32 0.044715, %v984_v6  ;;  %v1053_v54 = vmul.f32 0.044715, %v989_v26  ;;  %v1061_v32 = vmul.f32 0.044715, %v997_v36  ;;  %v3600_v42 = vadd.f32 %v1057_v37, %v3451_v23 }
 0x175   : > { %v1051_v11 = vmul.f32 0.044715, %v987_v15  ;;  %v1059_v29 = vmul.f32 0.044715, %v995_v19  ;;  %v990_v50 = vmul.f32 %v926_v1, %v3555_v40  ;;  %v3604_v48 = vadd.f32 %v1047_v17, %v3457_v47 }
 0x176   : > { %v3607_v25 = vadd.f32 %v1055_v16, %v3466_v62  ;;  %v998_v63 = vmul.f32 %v934_v20, %v3562_v33  ;;  %v988_v30 = vmul.f32 %v924_v58, %v3570_v3  ;;  %v3612_v26 = vadd.f32 %v1050_v9, %v3470_v24 }
 0x177   : > { %v2534_v6 = vpop.eup %2533  ;;  %v3615_v37 = vadd.f32 %v1058_v8, %v3480_v21  ;;  %v3618_v36 = vadd.f32 %v1056_v57, %v3484_v55  ;;  %v996_v43 = vmul.f32 %v932_v22, %v3580_v10  ;;  %v3622_v38 = vadd.f32 %v1048_v13, %v3519_v39 }
 0x178   : > { %v2536_v12 = vpop.eup %2535  ;;  %v3625_v17 = vadd.f32 %v1053_v54, %v3523_v28  ;;  %v3628_v15 = vadd.f32 %v1061_v32, %v3527_v52  ;;  %v1278_v19 = vadd.f32 1.0, %v2534_v6  ;;  %v3631_v16 = vadd.f32 %v1051_v11, %v3531_v60 }
 0x179   : > { %v2538_v1 = vpop.eup %2537  ;;  %v3634_v20 = vadd.f32 %v1059_v29, %v3541_v49  ;;  %v1054_v58 = vmul.f32 0.044715, %v990_v50  ;;  %v1285_v59 = vadd.f32 1.0, %v2536_v12  ;;  %v1062_v8 = vmul.f32 0.044715, %v998_v63 }
 0x17a   : > { %v2540_v9 = vpop.eup %2539  ;;  %v1052_v57 = vmul.f32 0.044715, %v988_v30  ;;  %v1342_v22 = vmul.f32 0.5, %v1278_v19  ;;  %v1284_v13 = vadd.f32 1.0, %v2538_v1  ;;  %v1060_v54 = vmul.f32 0.044715, %v996_v43 }
 0x17b   : > { %v1349_v55 = vmul.f32 0.5, %v1285_v59  ;;  %v1275_v21 = vadd.f32 1.0, %v2540_v9  ;;  %v1161_v32 = vmul.f32 0.7978846, %v3334_v46  ;;  %v1158_v11 = vmul.f32 0.7978846, %v3310_v35 }
 0x17c   : > { %v1406_v6 = vmul.f32 %v1342_v22, %v3157_v18  ;;  %v1348_v52 = vmul.f32 0.5, %v1284_v13  ;;  %v1169_v29 = vmul.f32 0.7978846, %v3353_v27  ;;  %v3642_v50 = vadd.f32 %v3304_v7, %v3043_v14  ;;  %v4395_v35 = vld [vmem:[#allocation18_spill] sm:$0xff]  ;;  %v4396_v19 = vld [vmem:[#allocation45_spill] sm:$0xff] }
 0x17d   : > { %v1413_v63 = vmul.f32 %v1349_v55, %v3138_v2  ;;  %v1339_v30 = vmul.f32 0.5, %v1275_v21  ;;  %2541 = vtanh.f32 %v1161_v32  ;;  %v1148_v18 = vmul.f32 0.7978846, %v3319_v53  ;;  %v4397_v53 = vld [vmem:[#allocation46_spill] sm:$0xff]  ;;  %v4399_v9 = vld [vmem:[#allocation9_spill] sm:$0xff] }
 0x17e   : > { %v1485_v43 = vsel %vm1463_vm1, %v1406_v6, 0.0  ;;  %v1412_v12 = vmul.f32 %v1348_v52, %v3183_v61  ;;  %2543 = vtanh.f32 %v1158_v11  ;;  %v1159_v7 = vmul.f32 0.7978846, %v3375_v56  ;;  %v4400_v22 = vld [vmem:[#allocation49_spill] sm:$0xff]  ;;  %v4401_v11 = vld [vmem:[#allocation68_spill] sm:$0xff] }
 0x17f   : > { %1486 = vadd.xlane.f32.xlu1 %v1485_v43  ;;  %v1506_v46 = vsel %vm1463_vm1, %v1413_v63, 0.0  ;;  %v1403_v27 = vmul.f32 %v1339_v30, %v4395_v35  ;;  %2545 = vtanh.f32 %v1169_v29  ;;  %v3653_v2 = vadd.f32 %v4396_v19, %v3043_v14  ;;  %v4403_v30 = vld [vmem:[#allocation24_spill] sm:$0xff] }
 0x180   : > { %1507 = vadd.xlane.f32.xlu0 %v1506_v46  ;;  %2547 = vtanh.f32 %v1148_v18  ;;  %v1167_v21 = vmul.f32 0.7978846, %v3414_v51  ;;  %v1170_v61 = vmul.f32 0.7978846, %v3423_v4  ;;  %v3659_v55 = vadd.f32 %v4397_v53, %v3041_v5  ;;  %v4398_v51 = vld [vmem:[#allocation48_spill] sm:$0xff] }
 0x181   : > { %2549 = vtanh.f32 %v1159_v7  ;;  %v1162_v52 = vmul.f32 0.7978846, %v3420_v34  ;;  %v1168_v1 = vmul.f32 0.7978846, %v3434_v41  ;;  %v937_v56 = vmul.f32 %v3642_v50, %v3642_v50  ;;  %v4404_v35 = vld [vmem:[#allocation8_spill] sm:$0xff] }
 0x182   : > { %v1503_v14 = vsel %vm1463_vm1, %v1412_v12, 0.0  ;;  %2551 = vtanh.f32 %v1167_v21  ;;  %v1160_v59 = vmul.f32 0.7978846, %v3428_v44  ;;  %v3669_v4 = vadd.f32 %v4398_v51, %v3041_v5  ;;  %v4406_v21 = vld [vmem:[#allocation54_spill] sm:$0xff]  ;;  %v4408_v51 = vld [vmem:[#allocation12_spill] sm:$0xff] }
 0x183   : > { %v3673_v13 = vadd.f32 %v4400_v22, %v4399_v9  ;;  %1504 = vadd.xlane.f32.xlu1 %v1503_v14  ;;  %v1476_v34 = vsel %vm1463_vm1, %v1403_v27, 0.0  ;;  %2553 = vtanh.f32 %v1170_v61  ;;  %v3677_v41 = vadd.f32 %v1054_v58, %v3555_v40  ;;  %v4405_v27 = vld [vmem:[#allocation51_spill] sm:$0xff] }
 0x184   : > { %v3680_v32 = vadd.f32 %v1062_v8, %v3562_v33  ;;  %v945_v44 = vmul.f32 %v3653_v2, %v3653_v2  ;;  %1477 = vadd.xlane.f32.xlu0 %v1476_v34  ;;  %2555 = vtanh.f32 %v1162_v52  ;;  %v3685_v5 = vadd.f32 %v1052_v57, %v3570_v3  ;;  %v4402_v8 = vld [vmem:[#allocation50_spill] sm:$0xff]  ;;  %v4407_v52 = vld [vmem:[#allocation23_spill] sm:$0xff]  ;;  %v4412_v33 = vld [vmem:[#allocation20_spill] sm:$0xff] }
 0x185   : > { %v935_v6 = vmul.f32 %v3659_v55, %v3659_v55  ;;  %2557 = vtanh.f32 %v1168_v1  ;;  %v1165_v29 = vmul.f32 0.7978846, %v4401_v11  ;;  %v3691_v58 = vadd.f32 %v1060_v54, %v3580_v10 }
 0x186   : > { %v3695_v63 = vadd.f32 %v4402_v8, %v4399_v9  ;;  %2559 = vtanh.f32 %v1160_v59  ;;  %v1163_v43 = vmul.f32 0.7978846, %v4403_v30  ;;  %v1001_v57 = vmul.f32 %v937_v56, %v3642_v50 }
 0x187   : > { %v2542_v12 = vpop.eup %2541  ;;  %v943_v18 = vmul.f32 %v3669_v4, %v3669_v4  ;;  %v938_v46 = vmul.f32 %v3673_v13, %v3673_v13  ;;  %v3705_v54 = vadd.f32 %v4405_v27, %v4404_v35  ;;  %v1009_v19 = vmul.f32 %v945_v44, %v3653_v2 }
 0x188   : > { %v2544_v7 = vpop.eup %2543  ;;  %v3710_v61 = vadd.f32 %v4406_v21, %v4404_v35  ;;  %v1289_v53 = vadd.f32 1.0, %v2542_v12  ;;  %v1173_v1 = vmul.f32 0.7978846, %v4407_v52  ;;  %v999_v14 = vmul.f32 %v935_v6, %v3659_v55  ;;  %v4409_v12 = vld [vmem:[#allocation28_spill] sm:$0xff]  ;;  %v4410_v21 = vld [vmem:[#allocation30_spill] sm:$0xff]  ;;  %v4411_v6 = vld [vmem:[#allocation25_spill] sm:$0xff] }
 0x189   : > { %v2546_v56 = vpop.eup %2545  ;;  %v1286_v59 = vadd.f32 1.0, %v2544_v7  ;;  %2561 = vtanh.f32 %v1165_v29  ;;  %v1171_v9 = vmul.f32 0.7978846, %v4408_v51  ;;  %v946_v34 = vmul.f32 %v3695_v63, %v3695_v63 }
 0x18a   : > { %v2548_v22 = vpop.eup %2547  ;;  %v1353_v11 = vmul.f32 0.5, %v1289_v53  ;;  %v1297_v44 = vadd.f32 1.0, %v2546_v56  ;;  %2563 = vtanh.f32 %v1163_v43  ;;  %v1164_v27 = vmul.f32 0.7978846, %v4409_v12 }
 0x18b   : > { %v2550_v8 = vpop.eup %2549  ;;  %v1350_v30 = vmul.f32 0.5, %v1286_v59  ;;  %v1276_v35 = vadd.f32 1.0, %v2548_v22  ;;  %v1166_v52 = vmul.f32 0.7978846, %v4410_v21  ;;  %2565 = vtanh.f32 %v1173_v1  ;;  %v4413_v59 = vld [vmem:[#allocation29_spill] sm:$0xff] }
 0x18c   : > { %v2552_v10 = vpop.eup %2551  ;;  %v1417_v7 = vmul.f32 %v1353_v11, %v4411_v6  ;;  %v1361_v29 = vmul.f32 0.5, %v1297_v44  ;;  %v1287_v3 = vadd.f32 1.0, %v2550_v8  ;;  %2567 = vtanh.f32 %v1171_v9  ;;  %v4414_v44 = vld [vmem:[#allocation21_spill] sm:$0xff] }
 0x18d   : > { %v2554_v51 = vpop.eup %2553  ;;  %v1414_v40 = vmul.f32 %v1350_v30, %v4412_v33  ;;  %v1340_v49 = vmul.f32 0.5, %v1276_v35  ;;  %v1295_v53 = vadd.f32 1.0, %v2552_v10  ;;  %v1065_v33 = vmul.f32 0.044715, %v1001_v57 }
 0x18e   : > { %v2556_v43 = vpop.eup %2555  ;;  %v1518_v56 = vsel %vm1463_vm1, %v1417_v7, 0.0  ;;  %v1425_v22 = vmul.f32 %v1361_v29, %v4413_v59  ;;  %v1351_v12 = vmul.f32 0.5, %v1287_v3  ;;  %v1298_v47 = vadd.f32 1.0, %v2554_v51 }
 0x18f   : > { %v2558_v21 = vpop.eup %2557  ;;  %1519 = vadd.xlane.f32.xlu1 %v1518_v56  ;;  %v1509_v11 = vsel %vm1463_vm1, %v1414_v40, 0.0  ;;  %v1404_v8 = vmul.f32 %v1340_v49, %v4414_v44  ;;  %v1359_v1 = vmul.f32 0.5, %v1295_v53  ;;  %v1290_v6 = vadd.f32 1.0, %v2556_v43  ;;  %v4415_v49 = vld [vmem:[#allocation31_spill] sm:$0xff]  ;;  %v4416_v43 = vld [vmem:[#allocation32_spill] sm:$0xff] }
 0x190   : > { %v2560_v60 = vpop.eup %2559  ;;  %v1007_v10 = vmul.f32 %v943_v18, %v3669_v4  ;;  %v936_v9 = vmul.f32 %v3705_v54, %v3705_v54  ;;  %1510 = vadd.xlane.f32.xlu0 %v1509_v11  ;;  %v1183_v30 = vmul.f32 0.7978846, %v3607_v25  ;;  %v1002_v3 = vmul.f32 %v938_v46, %v3673_v13  ;;  %v4418_v11 = vld [vmem:[#allocation26_spill] sm:$0xff] }
 0x191   : > { %v1362_v35 = vmul.f32 0.5, %v1298_v47  ;;  %v1296_v7 = vadd.f32 1.0, %v2558_v21  ;;  %2569 = vtanh.f32 %v1164_v27  ;;  %v1542_v40 = vsel %vm1463_vm1, %v1425_v22, 0.0 }
 0x192   : > { %v1415_v29 = vmul.f32 %v1351_v12, %v4415_v49  ;;  %v1354_v51 = vmul.f32 0.5, %v1290_v6  ;;  %2571 = vtanh.f32 %v1166_v52  ;;  %v944_v18 = vmul.f32 %v3710_v61, %v3710_v61  ;;  %v4417_v52 = vld [vmem:[#allocation37_spill] sm:$0xff]  ;;  %v4420_v49 = vld [vmem:[#allocation35_spill] sm:$0xff] }
 0x193   : > { %v2562_v57 = vpop.eup %2561  ;;  %1543 = vadd.xlane.f32.xlu1 %v1542_v40  ;;  %v1479_v53 = vsel %vm1463_vm1, %v1404_v8, 0.0  ;;  %v1423_v25 = vmul.f32 %v1359_v1, %v4416_v43  ;;  %v1288_v56 = vadd.f32 1.0, %v2560_v60  ;;  %v1073_v47 = vmul.f32 0.044715, %v1009_v19  ;;  %v4419_v1 = vld [vmem:[#allocation33_spill] sm:$0xff] }
 0x194   : > { %v2564_v46 = vpop.eup %2563  ;;  %v1063_v59 = vmul.f32 0.044715, %v999_v14  ;;  %v1010_v27 = vmul.f32 %v946_v34, %v3695_v63  ;;  %1480 = vadd.xlane.f32.xlu0 %v1479_v53  ;;  %2573 = vtanh.f32 %v1183_v30  ;;  %v3738_v22 = vadd.f32 %v1065_v33, %v3642_v50 }
 0x195   : > { %v1426_v12 = vmul.f32 %v1362_v35, %v4417_v52  ;;  %v1360_v21 = vmul.f32 0.5, %v1296_v7  ;;  %v1174_v44 = vmul.f32 0.7978846, %v4418_v11  ;;  %v2566_v6 = vpop.eup %2565  ;;  %v1512_v8 = vsel %vm1463_vm1, %v1415_v29, 0.0 }
 0x196   : > { %v1418_v60 = vmul.f32 %v1354_v51, %v4419_v1  ;;  %v1293_v40 = vadd.f32 1.0, %v2562_v57  ;;  %v1178_v19 = vmul.f32 0.7978846, %v3612_v26  ;;  %v2568_v14 = vpop.eup %2567  ;;  %v1536_v34 = vsel %vm1463_vm1, %v1423_v25, 0.0  ;;  %v4421_v57 = vld [vmem:[#allocation44_spill] sm:$0xff] }
 0x197   : > { %1513 = vadd.xlane.f32.xlu1 %v1512_v8  ;;  %v1352_v30 = vmul.f32 0.5, %v1288_v56  ;;  %v1291_v33 = vadd.f32 1.0, %v2564_v46  ;;  %v1172_v53 = vmul.f32 0.7978846, %v4420_v49  ;;  %v1071_v35 = vmul.f32 0.044715, %v1007_v10 }
 0x198   : > { %v1066_v7 = vmul.f32 0.044715, %v1002_v3  ;;  %v1000_v43 = vmul.f32 %v936_v9, %v3705_v54  ;;  %1537 = vadd.xlane.f32.xlu0 %v1536_v34  ;;  %v1176_v29 = vmul.f32 0.7978846, %v3622_v38  ;;  %v1545_v51 = vsel %vm1463_vm1, %v1426_v12, 0.0  ;;  %v4422_v10 = vld [vmem:[#allocation40_spill] sm:$0xff] }
 0x199   : > { %v1424_v52 = vmul.f32 %v1360_v21, %v4421_v57  ;;  %2575 = vtanh.f32 %v1174_v44  ;;  %v1177_v26 = vmul.f32 0.7978846, %v3597_v31  ;;  %v1521_v25 = vsel %vm1463_vm1, %v1418_v60, 0.0 }
 0x19a   : > { %v1357_v56 = vmul.f32 0.5, %v1293_v40  ;;  %v1301_v46 = vadd.f32 1.0, %v2566_v6  ;;  %2577 = vtanh.f32 %v1178_v19  ;;  %v1416_v3 = vmul.f32 %v1352_v30, %v4422_v10  ;;  %v4423_v19 = vld [vmem:[#allocation47_spill] sm:$0xff] }
 0x19b   : > { %v2570_v11 = vpop.eup %2569  ;;  %1546 = vadd.xlane.f32.xlu1 %v1545_v51  ;;  %v1355_v9 = vmul.f32 0.5, %v1291_v33  ;;  %v1299_v8 = vadd.f32 1.0, %v2568_v14  ;;  %2579 = vtanh.f32 %v1172_v53  ;;  %v3755_v12 = vadd.f32 %v1073_v47, %v3653_v2 }
 0x19c   : > { %v2572_v38 = vpop.eup %2571  ;;  %v3758_v21 = vadd.f32 %v1063_v59, %v3659_v55  ;;  %v1074_v31 = vmul.f32 0.044715, %v1010_v27  ;;  %v1008_v44 = vmul.f32 %v944_v18, %v3710_v61  ;;  %1522 = vadd.xlane.f32.xlu0 %v1521_v25  ;;  %v1539_v6 = vsel %vm1463_vm1, %v1424_v52, 0.0  ;;  %v4424_v27 = vld [vmem:[#allocation53_spill] sm:$0xff] }
 0x19d   : > { %2581 = vtanh.f32 %v1176_v29  ;;  %v1181_v1 = vmul.f32 0.7978846, %v3625_v17  ;;  %v1185_v60 = vmul.f32 0.7978846, %v3600_v42  ;;  %v1421_v14 = vmul.f32 %v1357_v56, %v4423_v19 }
 0x19e   : > { %v2574_v40 = vpop.eup %2573  ;;  %v1365_v34 = vmul.f32 0.5, %v1301_v46  ;;  %v1292_v47 = vadd.f32 1.0, %v2570_v11  ;;  %2583 = vtanh.f32 %v1177_v26  ;;  %v1515_v59 = vsel %vm1463_vm1, %v1416_v3, 0.0  ;;  %v4425_v26 = vld [vmem:[#allocation52_spill] sm:$0xff]  ;;  %v4426_v46 = vld [vmem:[#allocation55_spill] sm:$0xff] }
 0x19f   : > { %1540 = vadd.xlane.f32.xlu1 %v1539_v6  ;;  %v1419_v30 = vmul.f32 %v1355_v9, %v4424_v27  ;;  %v1363_v18 = vmul.f32 0.5, %v1299_v8  ;;  %v1294_v33 = vadd.f32 1.0, %v2572_v38  ;;  %v3768_v49 = vadd.f32 %v1071_v35, %v3669_v4  ;;  %v4427_v3 = vld [vmem:[#allocation16_spill] sm:$0xff]  ;;  %v4428_v9 = vld [vmem:[#allocation57_spill] sm:$0xff] }
 0x1a0   : > { %v3771_v17 = vadd.f32 %v1066_v7, %v3673_v13  ;;  %v1064_v42 = vmul.f32 0.044715, %v1000_v43  ;;  %1516 = vadd.xlane.f32.xlu0 %v1515_v59  ;;  %v1179_v53 = vmul.f32 0.7978846, %v3631_v16  ;;  %v3775_v29 = vadd.f32 %v1074_v31, %v3695_v63 }
 0x1a1   : > { %v1311_v51 = vadd.f32 1.0, %v2574_v40  ;;  %2585 = vtanh.f32 %v1181_v1  ;;  %v1175_v57 = vmul.f32 0.7978846, %v3604_v48  ;;  %v1530_v52 = vsel %vm1463_vm1, %v1421_v14, 0.0  ;;  %v4429_v48 = vld [vmem:[#allocation59_spill] sm:$0xff]  ;;  %v4430_v14 = vld [vmem:[#allocation61_spill] sm:$0xff] }
 0x1a2   : > { %v1429_v25 = vmul.f32 %v1365_v34, %v4425_v26  ;;  %v1356_v35 = vmul.f32 0.5, %v1292_v47  ;;  %2587 = vtanh.f32 %v1185_v60  ;;  %v1072_v7 = vmul.f32 0.044715, %v1008_v44 }
 0x1a3   : > { %v2576_v56 = vpop.eup %2575  ;;  %1531 = vadd.xlane.f32.xlu1 %v1530_v52  ;;  %v1524_v43 = vsel %vm1463_vm1, %v1419_v30, 0.0  ;;  %v1427_v16 = vmul.f32 %v1363_v18, %v4426_v46  ;;  %v1358_v11 = vmul.f32 0.5, %v1294_v33  ;;  %v3784_v8 = vadd.f32 %v4428_v9, %v4427_v3  ;;  %v4431_v30 = vld [vmem:[#allocation56_spill] sm:$0xff]  ;;  %v4432_v52 = vld [vmem:[#allocation10_spill] sm:$0xff] }
 0x1a4   : > { %v2578_v10 = vpop.eup %2577  ;;  %v3788_v38 = vadd.f32 %v4429_v48, %v4427_v3  ;;  %1525 = vadd.xlane.f32.xlu0 %v1524_v43  ;;  %v1302_v31 = vadd.f32 1.0, %v2576_v56  ;;  %2589 = vtanh.f32 %v1179_v53  ;;  %v3791_v44 = vadd.f32 %v1064_v42, %v3705_v54 }
 0x1a5   : > { %v2580_v6 = vpop.eup %2579  ;;  %v1375_v1 = vmul.f32 0.5, %v1311_v51  ;;  %v1187_v60 = vmul.f32 0.7978846, %v3634_v20  ;;  %v1186_v40 = vmul.f32 0.7978846, %v3615_v37  ;;  %v1554_v19 = vsel %vm1463_vm1, %v1429_v25, 0.0 }
 0x1a6   : > { %v1420_v34 = vmul.f32 %v1356_v35, %v4430_v14  ;;  %v1306_v47 = vadd.f32 1.0, %v2578_v10  ;;  %2591 = vtanh.f32 %v1175_v57  ;;  %v1548_v27 = vsel %vm1463_vm1, %v1427_v16, 0.0  ;;  %v4433_v57 = vld [vmem:[#allocation60_spill] sm:$0xff]  ;;  %v4434_v10 = vld [vmem:[#allocation58_spill] sm:$0xff] }
 0x1a7   : > { %v2582_v59 = vpop.eup %2581  ;;  %1555 = vadd.xlane.f32.xlu1 %v1554_v19  ;;  %v1422_v18 = vmul.f32 %v1358_v11, %v4431_v30  ;;  %v1366_v33 = vmul.f32 0.5, %v1302_v31  ;;  %v1300_v42 = vadd.f32 1.0, %v2580_v6  ;;  %v3800_v51 = vadd.f32 %v1072_v7, %v3710_v61  ;;  %v4436_v6 = vld [vmem:[#allocation19_spill] sm:$0xff] }
 0x1a8   : > { %v2584_v53 = vpop.eup %2583  ;;  %v941_v37 = vmul.f32 %v3784_v8, %v3784_v8  ;;  %v949_v20 = vmul.f32 %v3788_v38, %v3788_v38  ;;  %v3808_v26 = vadd.f32 %v4433_v57, %v4432_v52  ;;  %1549 = vadd.xlane.f32.xlu0 %v1548_v27  ;;  %v1439_v25 = vmul.f32 %v1375_v1, %v3466_v62  ;;  %v4437_v1 = vld [vmem:[#allocation63_spill] sm:$0xff] }
 0x1a9   : > { %2593 = vtanh.f32 %v1187_v60  ;;  %v1182_v35 = vmul.f32 0.7978846, %v3677_v41  ;;  %v1184_v56 = vmul.f32 0.7978846, %v3618_v36  ;;  %v1527_v7 = vsel %vm1463_vm1, %v1420_v34, 0.0  ;;  %v4435_v41 = vld [vmem:[#allocation62_spill] sm:$0xff] }
 0x1aa   : > { %v1370_v43 = vmul.f32 0.5, %v1306_v47  ;;  %v1304_v46 = vadd.f32 1.0, %v2582_v59  ;;  %2595 = vtanh.f32 %v1186_v40  ;;  %v1533_v11 = vsel %vm1463_vm1, %v1422_v18, 0.0  ;;  %v4438_v40 = vld [vmem:[#allocation64_spill] sm:$0xff] }
 0x1ab   : > { %v2586_v16 = vpop.eup %2585  ;;  %1528 = vadd.xlane.f32.xlu1 %v1527_v7  ;;  %v1430_v3 = vmul.f32 %v1366_v33, %v4434_v10  ;;  %v1364_v9 = vmul.f32 0.5, %v1300_v42  ;;  %v1305_v48 = vadd.f32 1.0, %v2584_v53  ;;  %v939_v62 = vmul.f32 %v3808_v26, %v3808_v26  ;;  %v4439_v42 = vld [vmem:[#allocation66_spill] sm:$0xff] }
 0x1ac   : > { %v2588_v31 = vpop.eup %2587  ;;  %v3820_v36 = vadd.f32 %v4435_v41, %v4432_v52  ;;  %v3824_v60 = vadd.f32 %v4437_v1, %v4436_v6  ;;  %v3828_v19 = vadd.f32 %v4438_v40, %v4436_v6  ;;  %1534 = vadd.xlane.f32.xlu0 %v1533_v11  ;;  %v1584_v14 = vsel %vm1463_vm1, %v1439_v25, 0.0  ;;  %v4441_v41 = vld [vmem:[#allocation67_spill] sm:$0xff] }
 0x1ad   : > { %2597 = vtanh.f32 %v1182_v35  ;;  %v1190_v34 = vmul.f32 0.7978846, %v3680_v32  ;;  %v1189_v47 = vmul.f32 0.7978846, %v3628_v15  ;;  %v1434_v27 = vmul.f32 %v1370_v43, %v3470_v24  ;;  %v4440_v15 = vld [vmem:[#allocation65_spill] sm:$0xff] }
 0x1ae   : > { %v2590_v59 = vpop.eup %2589  ;;  %v1368_v30 = vmul.f32 0.5, %v1304_v46  ;;  %v1309_v18 = vadd.f32 1.0, %v2586_v16  ;;  %2599 = vtanh.f32 %v1184_v56  ;;  %v1557_v33 = vsel %vm1463_vm1, %v1430_v3, 0.0 }
 0x1af   : > { %1585 = vadd.xlane.f32.xlu1 %v1584_v14  ;;  %v1428_v53 = vmul.f32 %v1364_v9, %v4439_v42  ;;  %v1369_v52 = vmul.f32 0.5, %v1305_v48  ;;  %v1313_v57 = vadd.f32 1.0, %v2588_v31  ;;  %v1005_v25 = vmul.f32 %v941_v37, %v3784_v8  ;;  %v4442_v42 = vld [vmem:[#allocation34_spill] sm:$0xff] }
 0x1b0   : > { %v2592_v7 = vpop.eup %2591  ;;  %v3838_v32 = vmul.f32 %v949_v20, %v3788_v38  ;;  %v3842_v35 = vadd.f32 %v4440_v15, %v3101_v45  ;;  %1558 = vadd.xlane.f32.xlu0 %v1557_v33  ;;  %v1193_v24 = vmul.f32 0.7978846, %v3738_v22  ;;  %v3847_v56 = vmul.f32 %v3820_v36, %v3820_v36 }
 0x1b1   : > { %v1307_v43 = vadd.f32 1.0, %v2590_v59  ;;  %2601 = vtanh.f32 %v1190_v34  ;;  %v1180_v46 = vmul.f32 0.7978846, %v3685_v5  ;;  %v1569_v37 = vsel %vm1463_vm1, %v1434_v27, 0.0 }
 0x1b2   : > { %v1432_v20 = vmul.f32 %v1368_v30, %v3519_v39  ;;  %v1373_v16 = vmul.f32 0.5, %v1309_v18  ;;  %2603 = vtanh.f32 %v1189_v47  ;;  %v1551_v10 = vsel %vm1463_vm1, %v1428_v53, 0.0 }
 0x1b3   : > { %v2594_v11 = vpop.eup %2593  ;;  %1570 = vadd.xlane.f32.xlu1 %v1569_v37  ;;  %v1433_v22 = vmul.f32 %v1369_v52, %v3447_v0  ;;  %v1377_v3 = vmul.f32 0.5, %v1313_v57  ;;  %v1303_v9 = vadd.f32 1.0, %v2592_v7  ;;  %v1003_v31 = vmul.f32 %v939_v62, %v3808_v26 }
 0x1b4   : > { %v2596_v48 = vpop.eup %2595  ;;  %v940_v5 = vmul.f32 %v3842_v35, %v3842_v35  ;;  %v3859_v6 = vadd.f32 %v4441_v41, %v3101_v45  ;;  %1552 = vadd.xlane.f32.xlu0 %v1551_v10  ;;  %2605 = vtanh.f32 %v1193_v24  ;;  %v3863_v39 = vmul.f32 %v3824_v60, %v3824_v60 }
 0x1b5   : > { %v1371_v1 = vmul.f32 0.5, %v1307_v43  ;;  %v1201_v0 = vmul.f32 0.7978846, %v3755_v12  ;;  %v1188_v40 = vmul.f32 0.7978846, %v3691_v58  ;;  %v1563_v62 = vsel %vm1463_vm1, %v1432_v20, 0.0 }
 0x1b6   : > { %v1437_v14 = vmul.f32 %v1373_v16, %v3523_v28  ;;  %v1315_v34 = vadd.f32 1.0, %v2594_v11  ;;  %2607 = vtanh.f32 %v1180_v46  ;;  %v1566_v45 = vsel %vm1463_vm1, %v1433_v22, 0.0  ;;  %v4443_v46 = vld [vmem:[#allocation22_spill] sm:$0xff] }
 0x1b7   : > { %v2598_v47 = vpop.eup %2597  ;;  %1564 = vadd.xlane.f32.xlu1 %v1563_v62  ;;  %v1441_v59 = vmul.f32 %v1377_v3, %v3451_v23  ;;  %v1367_v27 = vmul.f32 0.5, %v1303_v9  ;;  %v1314_v30 = vadd.f32 1.0, %v2596_v48  ;;  %v1067_v33 = vmul.f32 0.044715, %v1003_v31 }
 0x1b8   : > { %v2600_v18 = vpop.eup %2599  ;;  %v3873_v12 = vmul.f32 %v3828_v19, %v3828_v19  ;;  %v1004_v58 = vmul.f32 %v940_v5, %v3842_v35  ;;  %v948_v28 = vmul.f32 %v3859_v6, %v3859_v6  ;;  %1567 = vadd.xlane.f32.xlu0 %v1566_v45  ;;  %v1435_v53 = vmul.f32 %v1371_v1, %v4442_v42  ;;  %v4444_v5 = vld [vmem:[#allocation36_spill] sm:$0xff] }
 0x1b9   : > { %2609 = vtanh.f32 %v1201_v0  ;;  %v1191_v52 = vmul.f32 0.7978846, %v3758_v21  ;;  %v1199_v23 = vmul.f32 0.7978846, %v3768_v49  ;;  %v1578_v57 = vsel %vm1463_vm1, %v1437_v14, 0.0 }
 0x1ba   : > { %v1379_v7 = vmul.f32 0.5, %v1315_v34  ;;  %v1310_v15 = vadd.f32 1.0, %v2598_v47  ;;  %2611 = vtanh.f32 %v1188_v40  ;;  %v1590_v43 = vsel %vm1463_vm1, %v1441_v59, 0.0  ;;  %v4445_v40 = vld [vmem:[#allocation11_spill] sm:$0xff] }
 0x1bb   : > { %v2602_v24 = vpop.eup %2601  ;;  %1579 = vadd.xlane.f32.xlu1 %v1578_v57  ;;  %v1431_v37 = vmul.f32 %v1367_v27, %v4443_v46  ;;  %v1378_v20 = vmul.f32 0.5, %v1314_v30  ;;  %v1312_v16 = vadd.f32 1.0, %v2600_v18  ;;  %v1069_v10 = vmul.f32 0.044715, %v1005_v25 }
 0x1bc   : > { %v2604_v11 = vpop.eup %2603  ;;  %v1131_v22 = vadd.f32 %v1067_v33, %v3808_v26  ;;  %v1068_v21 = vmul.f32 0.044715, %v1004_v58  ;;  %v1012_v49 = vmul.f32 %v948_v28, %v3859_v6  ;;  %1591 = vadd.xlane.f32.xlu0 %v1590_v43  ;;  %v1572_v3 = vsel %vm1463_vm1, %v1435_v53, 0.0  ;;  %v4446_v58 = vld [vmem:[#allocation38_spill] sm:$0xff] }
 0x1bd   : > { %2613 = vtanh.f32 %v1191_v52  ;;  %v1200_v9 = vmul.f32 0.7978846, %v3800_v51  ;;  %v1194_v48 = vmul.f32 0.7978846, %v3771_v17  ;;  %v1443_v41 = vmul.f32 %v1379_v7, %v4444_v5 }
 0x1be   : > { %v2606_v31 = vpop.eup %2605  ;;  %v1374_v1 = vmul.f32 0.5, %v1310_v15  ;;  %v1318_v0 = vadd.f32 1.0, %v2602_v24  ;;  %2615 = vtanh.f32 %v1199_v23  ;;  %v1560_v25 = vsel %vm1463_vm1, %v1431_v37, 0.0 }
 0x1bf   : > { %1573 = vadd.xlane.f32.xlu1 %v1572_v3  ;;  %v1442_v62 = vmul.f32 %v1378_v20, %v4445_v40  ;;  %v1376_v14 = vmul.f32 0.5, %v1312_v16  ;;  %v1317_v34 = vadd.f32 1.0, %v2604_v11  ;;  %v1077_v45 = vmul.f32 0.044715, %v3838_v32  ;;  %v4448_v11 = vld [vmem:[#allocation39_spill] sm:$0xff] }
 0x1c0   : > { %v2608_v47 = vpop.eup %2607  ;;  %v1011_v51 = vmul.f32 %v3847_v56, %v3820_v36  ;;  %v1132_v17 = vadd.f32 %v1068_v21, %v3842_v35  ;;  %v1076_v59 = vmul.f32 0.044715, %v1012_v49  ;;  %1561 = vadd.xlane.f32.xlu0 %v1560_v25  ;;  %v1321_v27 = vadd.f32 1.0, %v2606_v31  ;;  %v4447_v56 = vld [vmem:[#allocation14_spill] sm:$0xff]  ;;  %v4449_v3 = vld [vmem:[#allocation27_spill] sm:$0xff] }
 0x1c1   : > { %2617 = vtanh.f32 %v1200_v9  ;;  %v1195_v30 = vmul.f32 0.7978846, %v1131_v22  ;;  %v1202_v18 = vmul.f32 0.7978846, %v3775_v29  ;;  %v1596_v33 = vsel %vm1463_vm1, %v1443_v41, 0.0 }
 0x1c2   : > { %v1438_v28 = vmul.f32 %v1374_v1, %v4446_v58  ;;  %v1382_v42 = vmul.f32 0.5, %v1318_v0  ;;  %2619 = vtanh.f32 %v1194_v48  ;;  %v1593_v32 = vsel %vm1463_vm1, %v1442_v62, 0.0 }
 0x1c3   : > { %v2610_v53 = vpop.eup %2609  ;;  %1597 = vadd.xlane.f32.xlu1 %v1596_v33  ;;  %v1440_v52 = vmul.f32 %v1376_v14, %v4447_v56  ;;  %v1381_v23 = vmul.f32 0.5, %v1317_v34  ;;  %v1308_v57 = vadd.f32 1.0, %v2608_v47  ;;  %v1133_v15 = vadd.f32 %v1069_v10, %v3784_v8 }
 0x1c4   : > { %v2612_v7 = vpop.eup %2611  ;;  %v1075_v24 = vmul.f32 0.044715, %v1011_v51  ;;  %v1006_v29 = vmul.f32 %v3863_v39, %v3824_v60  ;;  %v1140_v43 = vadd.f32 %v1076_v59, %v3859_v6  ;;  %1594 = vadd.xlane.f32.xlu0 %v1593_v32  ;;  %v1385_v46 = vmul.f32 0.5, %v1321_v27  ;;  %v4450_v51 = vld [vmem:[#allocation17_spill] sm:$0xff] }
 0x1c5   : > { %2621 = vtanh.f32 %v1195_v30  ;;  %v1196_v37 = vmul.f32 0.7978846, %v1132_v17  ;;  %v1192_v20 = vmul.f32 0.7978846, %v3791_v44  ;;  %v1581_v16 = vsel %vm1463_vm1, %v1438_v28, 0.0 }
 0x1c6   : > { %v1446_v22 = vmul.f32 %v1382_v42, %v4448_v11  ;;  %v1329_v21 = vadd.f32 1.0, %v2610_v53  ;;  %2623 = vtanh.f32 %v1202_v18  ;;  %v1587_v10 = vsel %vm1463_vm1, %v1440_v52, 0.0  ;;  %v4451_v52 = vld [vmem:[#allocation41_spill] sm:$0xff] }
 0x1c7   : > { %v2614_v49 = vpop.eup %2613  ;;  %1582 = vadd.xlane.f32.xlu1 %v1581_v16  ;;  %v1445_v39 = vmul.f32 %v1381_v23, %v4449_v3  ;;  %v1372_v9 = vmul.f32 0.5, %v1308_v57  ;;  %v1316_v48 = vadd.f32 1.0, %v2612_v7  ;;  %v1141_v5 = vadd.f32 %v1077_v45, %v3788_v38 }
 0x1c8   : > { %v2616_v31 = vpop.eup %2615  ;;  %v1139_v41 = vadd.f32 %v1075_v24, %v3820_v36  ;;  %v1070_v44 = vmul.f32 0.044715, %v1006_v29  ;;  %v1014_v1 = vmul.f32 %v3873_v12, %v3828_v19  ;;  %1588 = vadd.xlane.f32.xlu0 %v1587_v10  ;;  %v1449_v0 = vmul.f32 %v1385_v46, %v3642_v50 }
 0x1c9   : > { %2625 = vtanh.f32 %v1196_v37  ;;  %v1204_v25 = vmul.f32 0.7978846, %v1140_v43  ;;  %v1197_v40 = vmul.f32 0.7978846, %v1133_v15  ;;  %v1605_v62 = vsel %vm1463_vm1, %v1446_v22, 0.0 }
 0x1ca   : > { %v1393_v14 = vmul.f32 0.5, %v1329_v21  ;;  %v1319_v34 = vadd.f32 1.0, %v2614_v49  ;;  %2627 = vtanh.f32 %v1192_v20  ;;  %v1602_v45 = vsel %vm1463_vm1, %v1445_v39, 0.0 }
 0x1cb   : > { %v2618_v47 = vpop.eup %2617  ;;  %1606 = vadd.xlane.f32.xlu1 %v1605_v62  ;;  %v1436_v17 = vmul.f32 %v1372_v9, %v4450_v51  ;;  %v1380_v59 = vmul.f32 0.5, %v1316_v48  ;;  %v1327_v27 = vadd.f32 1.0, %v2616_v31  ;;  %v1078_v30 = vmul.f32 0.044715, %v1014_v1 }
 0x1cc   : > { %v2620_v12 = vpop.eup %2619  ;;  %1603 = vadd.xlane.f32.xlu0 %v1602_v45  ;;  %v1205_v50 = vmul.f32 0.7978846, %v1141_v5  ;;  %v1134_v18 = vadd.f32 %v1070_v44, %v3824_v60  ;;  %v1614_v33 = vsel %vm1463_vm1, %v1449_v0, 0.0  ;;  %2629 = vtanh.f32 %v1204_v25 }
 0x1cd   : > { %v1203_v58 = vmul.f32 0.7978846, %v1139_v41  ;;  %v1457_v28 = vmul.f32 %v1393_v14, %v3653_v2  ;;  %v1383_v42 = vmul.f32 0.5, %v1319_v34  ;;  %v1328_v53 = vadd.f32 1.0, %v2618_v47 }
 0x1ce   : > { %2631 = vtanh.f32 %v1197_v40  ;;  %v1575_v56 = vsel %vm1463_vm1, %v1436_v17, 0.0  ;;  %v1444_v23 = vmul.f32 %v1380_v59, %v4451_v52  ;;  %v1391_v57 = vmul.f32 0.5, %v1327_v27 }
 0x1cf   : > { %v2622_v32 = vpop.eup %2621  ;;  %1615 = vadd.xlane.f32.xlu1 %v1614_v33  ;;  %v1322_v7 = vadd.f32 1.0, %v2620_v12  ;;  %2633 = vtanh.f32 %v1205_v50  ;;  %v1142_v24 = vadd.f32 %v1078_v30, %v3828_v19  ;;  %v1198_v29 = vmul.f32 0.7978846, %v1134_v18 }
 0x1d0   : > { %v2624_v15 = vpop.eup %2623  ;;  %1576 = vadd.xlane.f32.xlu0 %v1575_v56  ;;  %2635 = vtanh.f32 %v1203_v58  ;;  %v1638_v2 = vsel %vm1463_vm1, %v1457_v28, 0.0  ;;  %v1447_v43 = vmul.f32 %v1383_v42, %v3659_v55  ;;  %v1392_v46 = vmul.f32 0.5, %v1328_v53 }
 0x1d1   : > { %v1323_v37 = vadd.f32 1.0, %v2622_v32  ;;  %v1599_v16 = vsel %vm1463_vm1, %v1444_v23, 0.0  ;;  %v1455_v11 = vmul.f32 %v1391_v57, %v3669_v4  ;;  %v1386_v22 = vmul.f32 0.5, %v1322_v7 }
 0x1d2   : > { %v1330_v21 = vadd.f32 1.0, %v2624_v15  ;;  %2637 = vtanh.f32 %v1198_v29  ;;  %v1206_v10 = vmul.f32 0.7978846, %v1142_v24  ;;  %v1608_v3 = vsel %vm1463_vm1, %v1447_v43, 0.0 }
 0x1d3   : > { %v2626_v20 = vpop.eup %2625  ;;  %1639 = vadd.xlane.f32.xlu1 %v1638_v2  ;;  %v1456_v39 = vmul.f32 %v1392_v46, %v3710_v61  ;;  %v1387_v9 = vmul.f32 0.5, %v1323_v37  ;;  %v1632_v31 = vsel %vm1463_vm1, %v1455_v11, 0.0  ;;  %v1450_v5 = vmul.f32 %v1386_v22, %v3673_v13 }
 0x1d4   : > { %v2628_v49 = vpop.eup %2627  ;;  %1600 = vadd.xlane.f32.xlu0 %v1599_v16  ;;  %v1324_v55 = vadd.f32 1.0, %v2626_v20  ;;  %v1394_v41 = vmul.f32 0.5, %v1330_v21  ;;  %2639 = vtanh.f32 %v1206_v10  ;;  %v1674_v45 = vlaneseq }
 0x1d5   : > { %v1320_v4 = vadd.f32 1.0, %v2628_v49  ;;  %v1635_v0 = vsel %vm1463_vm1, %v1456_v39, 0.0  ;;  %v1451_v25 = vmul.f32 %v1387_v9, %v3808_v26  ;;  %v1617_v14 = vsel %vm1463_vm1, %v1450_v5, 0.0 }
 0x1d6   : > { %v2630_v48 = vpop.eup %2629  ;;  %v1388_v40 = vmul.f32 0.5, %v1324_v55  ;;  %v1458_v34 = vmul.f32 %v1394_v41, %v3695_v63  ;;  %v3942_v28 = vand.u32 127, %v1674_v45 }
 0x1d7   : > { %1609 = vadd.xlane.f32.xlu1 %v1608_v3  ;;  %v1332_v61 = vadd.f32 1.0, %v2630_v48  ;;  %v1384_v47 = vmul.f32 0.5, %v1320_v4  ;;  %v1620_v51 = vsel %vm1463_vm1, %v1451_v25, 0.0  ;;  %v1656_v25 = vld [vmem:[%s4240_s3] sm:$0xff] }
 0x1d8   : > { %v2632_v44 = vpop.eup %2631  ;;  %1633 = vadd.xlane.f32.xlu0 %v1632_v31  ;;  %v1452_v17 = vmul.f32 %v1388_v40, %v3842_v35  ;;  %v1641_v26 = vsel %vm1463_vm1, %v1458_v34, 0.0  ;;  %v1754_v15 = vadd.s32 4294967288, %v3942_v28  ;;  %v1768_v46 = vadd.s32 4294967272, %v3942_v28  ;;  %v1658_v40 = vld [vmem:[%s4240_s3 + $0x10] sm:$0xff] }
 0x1d9   : > { %v2634_v1 = vpop.eup %2633  ;;  %v1325_v13 = vadd.f32 1.0, %v2632_v44  ;;  %v1396_v59 = vmul.f32 0.5, %v1332_v61  ;;  %v1448_v30 = vmul.f32 %v1384_v47, %v3705_v54  ;;  %v3946_v54 = vshrl.u32 %v1674_v45, 7  ;;  %v1661_v61 = vld [vmem:[%s4240_s3 + $0x28] sm:$0xff] }
 0x1da   : > { %v2636_v62 = vpop.eup %2635  ;;  %v1333_v27 = vadd.f32 1.0, %v2634_v1  ;;  %v1623_v63 = vsel %vm1463_vm1, %v1452_v17, 0.0  ;;  %v1659_v1 = vld [vmem:[%s4240_s3 + $0x18] sm:$0xff]  ;;  %v1775_v45 = vadd.s32 4294967264, %v3942_v28  ;;  %v1662_v17 = vld [vmem:[%s4240_s3 + $0x30] sm:$0xff] }
 0x1db   : > { %1636 = vadd.xlane.f32.xlu1 %v1635_v0  ;;  %v1389_v50 = vmul.f32 0.5, %v1325_v13  ;;  %v1331_v18 = vadd.f32 1.0, %v2636_v62  ;;  %v1460_v33 = vmul.f32 %v1396_v59, %v3859_v6  ;;  %v1611_v53 = vsel %vm1463_vm1, %v1448_v30, 0.0  ;;  %v1665_v59 = vld [vmem:[%s4240_s3 + $0x48] sm:$0xff] }
 0x1dc   : > { %1618 = vadd.xlane.f32.xlu0 %v1617_v14  ;;  %v2638_v12 = vpop.eup %2637  ;;  %v1397_v58 = vmul.f32 0.5, %v1333_v27  ;;  %v1761_v6 = vadd.s32 4294967280, %v3942_v28  ;;  %v3963_v20 = vsub.s32 %v1754_v15, %v3946_v54  ;;  %v3971_v21 = vsub.s32 %v1768_v46, %v3946_v54  ;;  %v1663_v14 = vld [vmem:[%s4240_s3 + $0x38] sm:$0xff] }
 0x1dd   : > { %v1453_v32 = vmul.f32 %v1389_v50, %v3784_v8  ;;  %v1395_v56 = vmul.f32 0.5, %v1331_v18  ;;  %v1326_v52 = vadd.f32 1.0, %v2638_v12  ;;  %v1647_v23 = vsel %vm1463_vm1, %v1460_v33, 0.0  ;;  %v1667_v12 = vld [vmem:[%s4240_s3 + $0x58] sm:$0xff] }
 0x1de   : > { %v2640_v35 = vpop.eup %2639  ;;  %v1461_v57 = vmul.f32 %v1397_v58, %v3788_v38  ;;  %v3960_v38 = vsub.s32 %v3942_v28, %v3946_v54  ;;  %v3968_v22 = vsub.s32 %v1761_v6, %v3946_v54  ;;  %v2447_v62 = vpack.c.bf16 %v1658_v40, %v1656_v25  ;;  %v1664_v58 = vld [vmem:[%s4240_s3 + $0x40] sm:$0xff] }
 0x1df   : > { %1621 = vadd.xlane.f32.xlu1 %v1620_v51  ;;  %v1626_v24 = vsel %vm1463_vm1, %v1453_v32, 0.0  ;;  %v1459_v8 = vmul.f32 %v1395_v56, %v3820_v36  ;;  %v1390_v29 = vmul.f32 0.5, %v1326_v52  ;;  %v1334_v2 = vadd.f32 1.0, %v2640_v35  ;;  %v1660_v51 = vld [vmem:[%s4240_s3 + $0x20] sm:$0xff]  ;;  %v1669_v35 = vld [vmem:[%s4240_s3 + $0x68] sm:$0xff]  ;;  %v1671_v56 = vld [vmem:[%s4240_s3 + $0x78] sm:$0xff] }
 0x1e0   : > { %1642 = vadd.xlane.f32.xlu0 %v1641_v26  ;;  %v1650_v37 = vsel %vm1463_vm1, %v1461_v57, 0.0  ;;  %v2449_v47 = vpack.c.bf16 %v1663_v14, %v1661_v61  ;;  %v2451_v27 = vpack.c.bf16 %v1662_v17, %v1660_v51  ;;  %v2453_v26 = vpack.c.bf16 %v1667_v12, %v1665_v59 }
 0x1e1   : > { %v1644_v16 = vsel %vm1463_vm1, %v1459_v8, 0.0  ;;  %v1454_v36 = vmul.f32 %v1390_v29, %v3824_v60  ;;  %v1398_v11 = vmul.f32 0.5, %v1334_v2  ;;  %v4019_v30 = vsub.s32 %v1775_v45, %v3946_v54  ;;  %v1670_v8 = vld [vmem:[%s4240_s3 + $0x70] sm:$0xff] }
 0x1e2   : > { %v3951_v7 = vpop.xlane.xlu0 %1495  ;;  %v2457_v57 = vpack.c.bf16 %v1671_v56, %v1669_v35  ;;  %v1782_v46 = vadd.s32 4294967256, %v3942_v28 }
 0x1e3   : > { %v1472_v42 = vpop.xlane.xlu1 %1471  ;;  %1624 = vadd.xlane.f32.xlu1 %v1623_v63  ;;  %v1629_v9 = vsel %vm1463_vm1, %v1454_v36, 0.0  ;;  %v1462_v60 = vmul.f32 %v1398_v11, %v3828_v19  ;;  %v1657_v19 = vld [vmem:[%s4240_s3 + $0x8] sm:$0xff] }
 0x1e4   : > { %1612 = vadd.xlane.f32.xlu0 %v1611_v53  ;;  %v1765_v55 = vrot.slane %v1472_v42, %v3968_v22  ;;  %v2445_v0 = vpack.c.bf16 %v1659_v1, %v1657_v19  ;;  %v1666_v42 = vld [vmem:[%s4240_s3 + $0x50] sm:$0xff]  ;;  %v1815_v53 = vrot.slane %v3951_v7, %v3968_v22  ;;  %v1668_v7 = vld [vmem:[%s4240_s3 + $0x60] sm:$0xff]  ;;  %v4052_v11 = vsub.s32 %v1782_v46, %v3946_v54 }
 0x1e5   : > { %v1653_v4 = vsel %vm1463_vm1, %v1462_v60, 0.0  ;;  %v2455_v32 = vpack.c.bf16 %v1666_v42, %v1664_v58  ;;  %v2459_v2 = vpack.c.bf16 %v1670_v8, %v1668_v7 }
 0x1e6   : > { %2446 = vmatprep.subr.bf16.mxu0 %v2445_v0 }
 0x1e7   : > { %1648 = vadd.xlane.f32.xlu1 %v1647_v23  ;;  %v1475_v43 = vpop.xlane.xlu1 %1474  ;;  %2448 = vmatpush1.bf16.msra.mxu0 %v2447_v62 }
 0x1e8   : > { %1627 = vadd.xlane.f32.xlu0 %v1626_v24  ;;  %v1772_v48 = vrot.slane %v1475_v43, %v3971_v21  ;;  %2450 = vmatprep.subr.bf16.mxu0 %v2449_v47  ;;  %v2743_v43 = vmov 0.0  }
 0x1e9   : > { %2156 = vmatprep.mubr.f32.mxu0 %v2743_v43 }
 0x1eb   : > { %1651 = vadd.xlane.f32.xlu1 %v1650_v37  ;;  %2452 = vmatpush1.bf16.msra.mxu0 %v2451_v27  ;;  %v1789_v37 = vadd.s32 4294967248, %v3942_v28 }
 0x1ec   : > { %1645 = vadd.xlane.f32.xlu0 %v1644_v16  ;;  %v1466_v49 = vpop.xlane.xlu0 %1465  ;;  %2454 = vmatprep.subr.bf16.mxu0 %v2453_v26 }
 0x1ed   : > { %v1469_v10 = vpop.xlane.xlu1 %1468  ;;  %v1753_v3 = vrot.slane %v1466_v49, %v3960_v38  ;;  %v4055_v49 = vsub.s32 %v1789_v37, %v3946_v54 }
 0x1ee   : > { %v1758_v39 = vrot.slane %v1469_v10, %v3963_v20 }
 0x1ef   : > { %2456 = vmatpush1.bf16.msra.mxu0 %v2455_v32 }
 0x1f0   : > { %1630 = vadd.xlane.f32.xlu0 %v1629_v9  ;;  %v1760_v31 = vsel %vm1759_vm2, %v1758_v39, %v1753_v3  ;;  %v1490_v44 = vpop.xlane.xlu0 %1489  ;;  %2458 = vmatprep.subr.bf16.mxu0 %v2457_v57 }
 0x1f1   : > { %v1767_v5 = vsel %vm1766_vm3, %v1765_v55, %v1760_v31  ;;  %v1806_v18 = vrot.slane %v1490_v44, %v3960_v38 }
 0x1f2   : > { %v3982_v41 = vsel %vm1773_vm4, %v1772_v48, %v1767_v5  ;;  %v1796_v5 = vadd.s32 4294967240, %v3942_v28 }
 0x1f3   : > { %2460 = vmatpush1.bf16.msra.mxu0 %v2459_v2 }
 0x1f4   : > { %1654 = vadd.xlane.f32.xlu0 %v1653_v4  ;;  %v4066_v4 = vsub.s32 %v1796_v5, %v3946_v54 }
 0x1fa   : > { %v4003_v34 = vpop.xlane.xlu1 %1483 }
 0x1fc   : > { %v1499_v13 = vpop.xlane.xlu0 %1498 }
 0x1fd   : > { %v1820_v52 = vrot.slane %v1499_v13, %v3971_v21 }
 0x1fe   : > { %v1502_v63 = vpop.xlane.xlu1 %1501 }
 0x1ff   : > { %v1825_v6 = vrot.slane %v1502_v63, %v4019_v30 }
 0x200   : > { %v1493_v50 = vpop.xlane.xlu0 %1492 }
 0x201   : > { %v1810_v33 = vrot.slane %v1493_v50, %v3963_v20 }
 0x203   : > { %v1811_v23 = vsel %vm1759_vm2, %v1810_v33, %v1806_v18 }
 0x204   : > { %v1816_v15 = vsel %vm1766_vm3, %v1815_v53, %v1811_v23 }
 0x205   : > { %v1821_v24 = vsel %vm1773_vm4, %v1820_v52, %v1816_v15 }
 0x206   : > { %v1826_v29 = vsel %vm1780_vm5, %v1825_v6, %v1821_v24 }
 0x20c   : > { %v1487_v16 = vpop.xlane.xlu1 %1486 }
 0x20d   : > { %v1508_v36 = vpop.xlane.xlu0 %1507  ;;  %v1800_v62 = vrot.slane %v1487_v16, %v4066_v4 }
 0x20e   : > { %v1835_v9 = vrot.slane %v1508_v36, %v4055_v49 }
 0x210   : > { %v1505_v10 = vpop.xlane.xlu1 %1504 }
 0x211   : > { %v1830_v3 = vrot.slane %v1505_v10, %v4052_v11  ;;  %v1478_v39 = vpop.xlane.xlu0 %1477 }
 0x212   : > { %v1779_v60 = vrot.slane %v1478_v39, %v4019_v30 }
 0x213   : > { %v1831_v55 = vsel %vm1787_vm6, %v1830_v3, %v1826_v29 }
 0x214   : > { %v1781_v48 = vsel %vm1780_vm5, %v1779_v60, %v3982_v41  ;;  %v1836_v31 = vsel %vm1794_vm7, %v1835_v9, %v1831_v55  ;;  %v1793_v41 = vrot.slane %v4003_v34, %v4055_v49 }
 0x21c   : > { %v1520_v44 = vpop.xlane.xlu1 %1519 }
 0x21d   : > { %v1511_v19 = vpop.xlane.xlu0 %1510  ;;  %v1854_v33 = vrot.slane %v1520_v44, %v3968_v22 }
 0x21e   : > { %v1840_v1 = vrot.slane %v1511_v19, %v4066_v4 }
 0x220   : > { %v1841_v0 = vsel %vm1801_vm8, %v1840_v1, %v1836_v31  ;;  %v1544_v25 = vpop.xlane.xlu1 %1543 }
 0x221   : > { %v1481_v40 = vpop.xlane.xlu0 %1480  ;;  %v1893_v50 = vrot.slane %v1544_v25, %v3968_v22 }
 0x222   : > { %v1786_v61 = vrot.slane %v1481_v40, %v4052_v11 }
 0x224   : > { %v1788_v28 = vsel %vm1787_vm6, %v1786_v61, %v1781_v48  ;;  %v1514_v14 = vpop.xlane.xlu1 %1513 }
 0x225   : > { %v1795_v47 = vsel %vm1794_vm7, %v1793_v41, %v1788_v28  ;;  %v1538_v13 = vpop.xlane.xlu0 %1537  ;;  %v1845_v18 = vrot.slane %v1514_v14, %v3960_v38 }
 0x226   : > { %v1802_v45 = vsel %vm1801_vm8, %v1800_v62, %v1795_v47  ;;  %v1884_v12 = vrot.slane %v1538_v13, %v3960_v38 }
 0x227   : > { %v2077_v51 = vsel %vm2076_vm9, %v1841_v0, %v1802_v45 }
 0x228   : > { %v1547_v17 = vpop.xlane.xlu1 %1546 }
 0x229   : > { %v1523_v59 = vpop.xlane.xlu0 %1522  ;;  %v1898_v58 = vrot.slane %v1547_v17, %v3971_v21 }
 0x22a   : > { %v1859_v35 = vrot.slane %v1523_v59, %v3971_v21 }
 0x22c   : > { %v1541_v27 = vpop.xlane.xlu1 %1540 }
 0x22d   : > { %v1888_v26 = vrot.slane %v1541_v27, %v3963_v20  ;;  %v1517_v34 = vpop.xlane.xlu0 %1516 }
 0x22e   : > { %v1849_v63 = vrot.slane %v1517_v34, %v3963_v20 }
 0x22f   : > { %v1889_v42 = vsel %vm1759_vm2, %v1888_v26, %v1884_v12 }
 0x230   : > { %v1894_v53 = vsel %vm1766_vm3, %v1893_v50, %v1889_v42  ;;  %v1850_v32 = vsel %vm1759_vm2, %v1849_v63, %v1845_v18  ;;  %v1532_v56 = vpop.xlane.xlu1 %1531 }
 0x231   : > { %v1855_v52 = vsel %vm1766_vm3, %v1854_v33, %v1850_v32  ;;  %v1526_v23 = vpop.xlane.xlu0 %1525  ;;  %v1899_v57 = vsel %vm1773_vm4, %v1898_v58, %v1894_v53  ;;  %v1874_v16 = vrot.slane %v1532_v56, %v4055_v49 }
 0x232   : > { %v1860_v6 = vsel %vm1773_vm4, %v1859_v35, %v1855_v52  ;;  %v1864_v15 = vrot.slane %v1526_v23, %v4019_v30 }
 0x234   : > { %v1865_v24 = vsel %vm1780_vm5, %v1864_v15, %v1860_v6  ;;  %v1556_v7 = vpop.xlane.xlu1 %1555 }
 0x235   : > { %v1550_v8 = vpop.xlane.xlu0 %1549  ;;  %v1913_v44 = vrot.slane %v1556_v7, %v4055_v49 }
 0x236   : > { %v1903_v29 = vrot.slane %v1550_v8, %v4019_v30 }
 0x238   : > { %v1904_v2 = vsel %vm1780_vm5, %v1903_v29, %v1899_v57  ;;  %v1529_v43 = vpop.xlane.xlu1 %1528 }
 0x239   : > { %v1869_v46 = vrot.slane %v1529_v43, %v4052_v11  ;;  %v1535_v37 = vpop.xlane.xlu0 %1534 }
 0x23a   : > { %v1879_v10 = vrot.slane %v1535_v37, %v4066_v4 }
 0x23b   : > { %v1870_v36 = vsel %vm1787_vm6, %v1869_v46, %v1865_v24 }
 0x23c   : > { %v1875_v3 = vsel %vm1794_vm7, %v1874_v16, %v1870_v36  ;;  %v1586_v39 = vpop.xlane.xlu1 %1585 }
 0x23d   : > { %v1880_v9 = vsel %vm1801_vm8, %v1879_v10, %v1875_v3  ;;  %v1559_v60 = vpop.xlane.xlu0 %1558  ;;  %v1962_v52 = vrot.slane %v1586_v39, %v3960_v38 }
 0x23e   : > { %v2079_v55 = vsel %vm2078_vm10, %v1880_v9, %v2077_v51  ;;  %v1918_v19 = vrot.slane %v1559_v60, %v4066_v4 }
 0x240   : > { %v1571_v48 = vpop.xlane.xlu1 %1570 }
 0x241   : > { %v1553_v31 = vpop.xlane.xlu0 %1552  ;;  %v1937_v43 = vrot.slane %v1571_v48, %v3971_v21 }
 0x242   : > { %v1908_v5 = vrot.slane %v1553_v31, %v4052_v11 }
 0x244   : > { %v1909_v1 = vsel %vm1787_vm6, %v1908_v5, %v1904_v2  ;;  %v1565_v0 = vpop.xlane.xlu1 %1564 }
 0x245   : > { %v1914_v25 = vsel %vm1794_vm7, %v1913_v44, %v1909_v1  ;;  %v1568_v40 = vpop.xlane.xlu0 %1567  ;;  %v1927_v32 = vrot.slane %v1565_v0, %v3963_v20 }
 0x246   : > { %v1919_v61 = vsel %vm1801_vm8, %v1918_v19, %v1914_v25  ;;  %v1932_v57 = vrot.slane %v1568_v40, %v3968_v22 }
 0x247   : > { %v4107_v41 = vsel %vm2080_vm11, %v1919_v61, %v2079_v55 }
 0x248   : > { %v4109_v62 = vpop.xlane.xlu1 %1579 }
 0x249   : > { %v1592_v28 = vpop.xlane.xlu0 %1591 }
 0x24a   : > { %v1971_v15 = vrot.slane %v1592_v28, %v3968_v22 }
 0x24c   : > { %v1574_v14 = vpop.xlane.xlu1 %1573 }
 0x24d   : > { %v1562_v47 = vpop.xlane.xlu0 %1561  ;;  %v1942_v48 = vrot.slane %v1574_v14, %v4019_v30 }
 0x24e   : > { %v1923_v42 = vrot.slane %v1562_v47, %v3960_v38 }
 0x250   : > { %v1598_v13 = vpop.xlane.xlu1 %1597  ;;  %v1928_v23 = vsel %vm1759_vm2, %v1927_v32, %v1923_v42 }
 0x251   : > { %v1595_v45 = vpop.xlane.xlu0 %1594  ;;  %v1933_v7 = vsel %vm1766_vm3, %v1932_v57, %v1928_v23 }
 0x252   : > { %v1976_v16 = vrot.slane %v1595_v45, %v3971_v21  ;;  %v1938_v3 = vsel %vm1773_vm4, %v1937_v43, %v1933_v7 }
 0x253   : > { %v1943_v1 = vsel %vm1780_vm5, %v1942_v48, %v1938_v3 }
 0x254   : > { %v4111_v51 = vpop.xlane.xlu1 %1582 }
 0x255   : > { %v1589_v17 = vpop.xlane.xlu0 %1588 }
 0x256   : > { %v1966_v35 = vrot.slane %v1589_v17, %v3963_v20 }
 0x258   : > { %v4113_v59 = vpop.xlane.xlu1 %1606  ;;  %v1967_v6 = vsel %vm1759_vm2, %v1966_v35, %v1962_v52 }
 0x259   : > { %v4115_v27 = vpop.xlane.xlu0 %1603  ;;  %v1972_v46 = vsel %vm1766_vm3, %v1971_v15, %v1967_v6 }
 0x25a   : > { %v1977_v31 = vsel %vm1773_vm4, %v1976_v16, %v1972_v46 }
 0x25c   : > { %v1616_v12 = vpop.xlane.xlu1 %1615 }
 0x25d   : > { %v1577_v26 = vpop.xlane.xlu0 %1576  ;;  %v2010_v37 = vrot.slane %v1616_v12, %v3968_v22 }
 0x25e   : > { %v1947_v39 = vrot.slane %v1577_v26, %v4052_v11 }
 0x260   : > { %v1640_v34 = vpop.xlane.xlu1 %1639  ;;  %v1948_v28 = vsel %vm1787_vm6, %v1947_v39, %v1943_v1 }
 0x261   : > { %v1601_v50 = vpop.xlane.xlu0 %1600  ;;  %v2049_v14 = vrot.slane %v1640_v34, %v3968_v22 }
 0x262   : > { %v1986_v5 = vrot.slane %v1601_v50, %v4052_v11 }
 0x264   : > { %v1610_v18 = vpop.xlane.xlu1 %1609 }
 0x265   : > { %v1634_v63 = vpop.xlane.xlu0 %1633  ;;  %v2001_v8 = vrot.slane %v1610_v18, %v3960_v38 }
 0x266   : > { %v2040_v44 = vrot.slane %v1634_v63, %v3960_v38 }
 0x268   : > { %v1637_v33 = vpop.xlane.xlu1 %1636 }
 0x269   : > { %v1619_v58 = vpop.xlane.xlu0 %1618  ;;  %v2044_v36 = vrot.slane %v1637_v33, %v3963_v20 }
 0x26a   : > { %v2015_v9 = vrot.slane %v1619_v58, %v3971_v21  ;;  %v1996_v58 = vrot.slane %v4113_v59, %v4066_v4 }
 0x26b   : > { %v2045_v0 = vsel %vm1759_vm2, %v2044_v36, %v2040_v44 }
 0x26c   : > { %v1622_v53 = vpop.xlane.xlu1 %1621  ;;  %v2050_v26 = vsel %vm1766_vm3, %v2049_v14, %v2045_v0 }
 0x26d   : > { %v1643_v56 = vpop.xlane.xlu0 %1642  ;;  %v2020_v25 = vrot.slane %v1622_v53, %v4019_v30 }
 0x26e   : > { %v2054_v40 = vrot.slane %v1643_v56, %v3971_v21  ;;  %v1991_v21 = vrot.slane %v4115_v27, %v4055_v49 }
 0x270   : > { %v1625_v29 = vpop.xlane.xlu1 %1624  ;;  %v2055_v34 = vsel %vm1773_vm4, %v2054_v40, %v2050_v26 }
 0x271   : > { %v1613_v24 = vpop.xlane.xlu0 %1612  ;;  %v2025_v50 = vrot.slane %v1625_v29, %v4052_v11 }
 0x272   : > { %v2005_v2 = vrot.slane %v1613_v24, %v3963_v20  ;;  %v1981_v20 = vrot.slane %v1598_v13, %v4019_v30  ;;  %v1952_v13 = vrot.slane %v4109_v62, %v4055_v49  ;;  %v1957_v62 = vrot.slane %v4111_v51, %v4066_v4 }
 0x274   : > { %v2006_v10 = vsel %vm1759_vm2, %v2005_v2, %v2001_v8  ;;  %v1649_v61 = vpop.xlane.xlu1 %1648  ;;  %v1982_v47 = vsel %vm1780_vm5, %v1981_v20, %v1977_v31  ;;  %v1953_v22 = vsel %vm1794_vm7, %v1952_v13, %v1948_v28  ;;  %v1680_v2 = vsub.s32 1, %v3946_v54 }
 0x275   : > { %v2011_v60 = vsel %vm1766_vm3, %v2010_v37, %v2006_v10  ;;  %v1628_v55 = vpop.xlane.xlu0 %1627  ;;  %v1987_v45 = vsel %vm1787_vm6, %v1986_v5, %v1982_v47  ;;  %v2064_v42 = vrot.slane %v1649_v61, %v4052_v11  ;;  %v1958_v32 = vsel %vm1801_vm8, %v1957_v62, %v1953_v22 }
 0x276   : > { %v2016_v19 = vsel %vm1773_vm4, %v2015_v9, %v2011_v60  ;;  %v2030_v18 = vrot.slane %v1628_v55, %v4055_v49  ;;  %v1992_v63 = vsel %vm1794_vm7, %v1991_v21, %v1987_v45  ;;  %v2083_v57 = vsel %vm2082_vm12, %v1958_v32, %v4107_v41  ;;  %v1672_v41 = vld [vmem:[%s4241_s4] sm:$0x3] }
 0x277   : > { %v2021_v17 = vsel %vm1780_vm5, %v2020_v25, %v2016_v19  ;;  %v1997_v51 = vsel %vm1801_vm8, %v1996_v58, %v1992_v63  ;;  %v1681_v43 = vrot.slane %v1672_v41, %v1680_v2 }
 0x278   : > { %v1652_v35 = vpop.xlane.xlu1 %1651  ;;  %v2085_v15 = vsel %vm2084_vm13, %v1997_v51, %v2083_v57 }
 0x279   : > { %v1646_v38 = vpop.xlane.xlu0 %1645  ;;  %v2069_v23 = vrot.slane %v1652_v35, %v4055_v49  ;;  %v1676_v49 = vsub.s32 0, %v3946_v54 }
 0x27a   : > { %v2059_v12 = vrot.slane %v1646_v38, %v4019_v30  ;;  %v2026_v30 = vsel %vm1787_vm6, %v2025_v50, %v2021_v17 }
 0x27b   : > { %v2031_v56 = vsel %vm1794_vm7, %v2030_v18, %v2026_v30 }
 0x27c   : > { %v2060_v33 = vsel %vm1780_vm5, %v2059_v12, %v2055_v34 }
 0x27d   : > { %v1631_v27 = vpop.xlane.xlu0 %1630  ;;  %v2065_v52 = vsel %vm1787_vm6, %v2064_v42, %v2060_v33 }
 0x27e   : > { %v2035_v53 = vrot.slane %v1631_v27, %v4066_v4  ;;  %v2070_v24 = vsel %vm1794_vm7, %v2069_v23, %v2065_v52 }
 0x280   : > { %v2036_v59 = vsel %vm1801_vm8, %v2035_v53, %v2031_v56 }
 0x281   : > { %v1655_v11 = vpop.xlane.xlu0 %1654  ;;  %v2087_v7 = vsel %vm2086_vm14, %v2036_v59, %v2085_v15 }
 0x282   : > { %v2074_v6 = vrot.slane %v1655_v11, %v4066_v4  ;;  %v1677_v4 = vrot.slane %v1672_v41, %v1676_v49 }
 0x284   : > { %v2075_v8 = vsel %vm1801_vm8, %v2074_v6, %v2070_v24 }
 0x285   : > { %v2089_v29 = vsel %vm2088_vm15, %v2075_v8, %v2087_v7 }
 0x286   : > { %2292 = vmatmul.mubr.msk.f32.vlgmr.msra.gmra.mrb[32].mxu0 %vm1463_vm1, %v2089_v29 }
 0x359   : > { %v2158_v46 = vpop.f32.mrb[32].mxu0 }
 0x35a   : > { %v2159_v37 = vadd.f32 %v2158_v46, %v1677_v4  ;;  %v2160_v16 = vpop.f32.mrb[33].mxu0 }
 0x35b   : > { %v2161_v36 = vadd.f32 %v2160_v16, %v1681_v43 }
 0x35c   : > { %2163 = vst [vmem:[%s243_s11] sm:$0xff] %v2159_v37 }
 0x35d   : > { %2164 = vst [vmem:[%s243_s11 + $0x8] sm:$0xff] %v2161_v36 }
 0x35e   : > { %2684 = shalt.err (!%p2681_p2)
}
 0x35f   : > { %s2685_s23 = scalar_lea.hbm %s4193_s26, 256  ;;  %s2689_s8 = scalar_lea.hbm %s4242_s5, 512 }
 0x360   : > { %p2686_p4 = scmp.ne.s32.totalorder %s4193_s26, %s2685_s23  ;;  %p2690_p9 = scmp.lt.u32.totalorder %s4193_s26, %s4242_s5 }
 0x361   : > { %p2691_p1 = scmp.lt.u32.totalorder %s2689_s8, %s2685_s23  ;;  %p2693_p6 = scmp.lt.u32.totalorder %s2685_s23, %s4193_s26 }
 0x362   : > { %p2687_p5 = pnand %p2686_p4, %p4452_p11 }
 0x363   : > { %p2692_p3 = por %p2691_p1, %p2690_p9 }
 0x364   : > { %p2688_p7 = pneg %p2687_p5 }
 0x365   : > { %p2694_p12 = por %p2693_p6, %p2692_p3 }
 0x367   : > { %p2695_p13 = pnand %p2694_p12, %p2688_p7 }
 0x369   : > { %2698 = shalt.err (!%p2695_p13)
}
 0x36a   : > { %2463 = dma.vmem_to_hbm [thread:$0]  (%p4452_p11), %s4195_s13, 256, %s4193_s26, %s2166_s29  }
 0x36b PF: > { %s2192_s10 = sand.u32 1, %s2725_s18   ;;  %p4453_p8 = scmp.ne.s32.totalorder %s4293_s6, 0 }
 0x36c   : > { %p4454_p10 = scmp.ge.s32.totalorder %s2737_s21, 2  ;;  %s2193_s11 = scalar_lea.sflag [#allocation4], %s2192_s10 }
 0x36e   : > { %p2470_p0 = pnand %p4454_p10, %p4453_p8 }
 0x370   : > { %2720 = dma.done.wait (!%p2470_p0), %s2193_s11, 256  }
 0x371   : > { %2722 = vsyncadd (!%p2470_p0), %s2193_s11, 4294967040  ;;  %p18_p2 = scmp.ge.s32.totalorder %s2800_s24, 4   ;;  %s4455_s18 = smov %s2729_s19 }
 0x372   : > { %s4456_s19 = smov %s2733_s20  ;;  %s4457_s20 = smov %s2812_s27 }
 0x373   : > { %s4458_s21 = smov %s2800_s24  ;;  %20 = sbr.rel (!%p18_p2) target bundleno = 5 (0x5), region = 85 }
 0x37a   :  { %2198 = vsyncpa [#allocation3], 1 }
 0x37b   :  { %2200 = vsyncpa [#allocation3 + $0x1], 1 }
 0x37c   :  { %2201 = vsyncpa [#allocation4], 1 }
 0x37d   :  { %2203 = vsyncpa [#allocation4 + $0x1], 1 }

</bundles_post_ra>
